<compile_context>
chip_gen: v6e
topology: v6e:2x2x1
jax: 0.10.0
libtpu: 0.0.40
codegen_flags: <defaults>
</compile_context>

<pallas_src>
import functools
import math

import jax
import jax.numpy as jnp
from jax.experimental import pallas as pl
from jax.experimental.pallas import tpu as pltpu


def _layernorm(x, gamma, beta, eps):
    # Matches the custom PyTorch LayerNorm: unbiased std (ddof=1), divide by (std + eps).
    mean = jnp.mean(x, axis=-1, keepdims=True)
    d = x - mean
    var = jnp.sum(d * d, axis=-1, keepdims=True) * (1.0 / (x.shape[-1] - 1))
    inv = pl.reciprocal(jnp.sqrt(var) + eps, approx=True)     # EUP slot, frees VALU
    return gamma * (d * inv) + beta


def encoder_layer_kernel(xq_ref, xkv_ref,
                         wq_ref, bq_ref,
                         wkv_ref, bkv_ref,
                         wo_ref, bo_ref,
                         g1_ref, be1_ref,
                         w1_ref, b1_ref, w2_ref, b2_ref,
                         g2_ref, be2_ref,
                         o_ref,
                         ctx_ref,
                         *, n_heads, eps, matmul_dtype):
    xq_f32 = xq_ref[...].astype(jnp.float32)        # (tq, H) query tile (kept f32 for residual)
    xq = xq_f32.astype(matmul_dtype)
    xkv = xkv_ref[...].astype(matmul_dtype)         # (S,  H) full sequence for K/V

    tq, H = xq_f32.shape
    hd = H // n_heads
    inv_scale = float(hd) ** -0.5

    # ---- projections: q on the query tile, fused K/V on the full sequence ----
    q = jnp.dot(xq, wq_ref[...], preferred_element_type=jnp.float32) + bq_ref[...]       # (tq, H)
    kv = jnp.dot(xkv, wkv_ref[...], preferred_element_type=jnp.float32) + bkv_ref[...]   # (S, 2H)
    k = kv[:, :H]
    v = kv[:, H:]

    # ---- per-head attention (scores/softmax/context); contexts written to a
    #      VMEM scratch so the output projection is ONE full-width K=H matmul ----
    # TODO(synk): trg_mask (masked_fill) path not implemented; matches mask=None default.
    for h in range(n_heads):                         # static unroll, n_heads is small
        sl = slice(h * hd, (h + 1) * hd)
        qh = q[:, sl].astype(matmul_dtype)
        kh = k[:, sl].astype(matmul_dtype)
        vh = v[:, sl].astype(matmul_dtype)
        # q @ k^T without an in-kernel transpose: contract last dim of both operands.
        e = jax.lax.dot_general(qh, kh, (((1,), (1,)), ((), ())),
                                preferred_element_type=jnp.float32) * inv_scale           # (tq, S)
        e = e - jnp.max(e, axis=-1, keepdims=True)
        p = jnp.exp(e)
        p = p * pl.reciprocal(jnp.sum(p, axis=-1, keepdims=True), approx=True)
        ctx_ref[:, sl] = jnp.dot(p.astype(matmul_dtype), vh,
                                 preferred_element_type=jnp.float32)                     # (tq, hd)

    # single output projection with K = H (no per-head wo slices / transposes)
    sa = jnp.dot(ctx_ref[...].astype(matmul_dtype), wo_ref[...],
                 preferred_element_type=jnp.float32) + bo_ref[...]

    # ---- residual + LayerNorm 1 ----
    t1 = _layernorm(xq_f32 + sa, g1_ref[...], be1_ref[...], eps)

    # ---- Positionwise feed-forward (Conv1d k=1 == Linear), dropout = identity ----
    h1 = jnp.dot(t1.astype(matmul_dtype), w1_ref[...],
                 preferred_element_type=jnp.float32) + b1_ref[...]
    h1 = jnp.maximum(h1, 0.0)                                                             # ReLU
    h2 = jnp.dot(h1.astype(matmul_dtype), w2_ref[...],
                 preferred_element_type=jnp.float32) + b2_ref[...]

    # ---- residual + LayerNorm 2 ----
    t2 = _layernorm(t1 + h2, g2_ref[...], be2_ref[...], eps)

    o_ref[...] = t2.astype(o_ref.dtype)


def encoder_layer(x, params, *, n_heads, eps=1e-12,
                  matmul_dtype=jnp.bfloat16, seq_tile=128):
    B, S, H = x.shape
    assert H % n_heads == 0, "hid_dim must be divisible by n_heads"
    PF = params["w1"].shape[0]

    # --- one-time layout plumbing in the wrapper (not per-grid-step compute) ---
    # Pre-transpose every weight so the kernel does x @ W, fuse K/V into a single
    # (H, 2H) matmul, and cast MXU operands to bf16 (f32 accumulation in-kernel).
    wdt = matmul_dtype
    wq_t = params["wq"].T.astype(wdt)                                                  # (H, H)
    wkv_t = jnp.concatenate([params["wk"].T, params["wv"].T], axis=1).astype(wdt)      # (H, 2H)
    bkv = jnp.concatenate([params["bk"], params["bv"]], axis=1)                        # (1, 2H)
    wo_t = params["wo"].T.astype(wdt)                                                  # (H, H)
    w1_t = params["w1"].T.astype(wdt)                                                  # (H, PF)
    w2_t = params["w2"].T.astype(wdt)                                                  # (PF, H)

    weights = [wq_t, params["bq"], wkv_t, bkv, wo_t, params["bo"],
               params["g1"], params["be1"],
               w1_t, params["b1"], w2_t, params["b2"],
               params["g2"], params["be2"]]

    # Sequence tiling over queries: bounds the live set for long S; weights and the
    # full-seq K/V block use constant index maps, so they stay resident across tiles.
    tq = seq_tile if (S % seq_tile == 0) else S
    grid = (B, S // tq)

    def wspec(shape):
        nd = len(shape)
        return pl.BlockSpec(shape, lambda b, s, _nd=nd: (0,) * _nd)

    in_specs = [
        pl.BlockSpec((None, tq, H), lambda b, s: (b, s, 0)),   # query tile    -> (tq, H)
        pl.BlockSpec((None, S, H), lambda b, s: (b, 0, 0)),    # full seq K/V  -> (S, H)
    ]
    in_specs += [wspec(tuple(w.shape)) for w in weights]
    out_spec = pl.BlockSpec((None, tq, H), lambda b, s: (b, s, 0))

    # Explicit VMEM budget: default scoped limit (16/32 MiB) is easily exceeded by
    # double-buffered weights + activation tiles at realistic H / pf.
    weight_bytes = sum(int(w.size) * w.dtype.itemsize for w in weights)
    act_bytes = 4 * (8 * tq * H + 3 * S * H + tq * S + 2 * tq * PF)
    vmem_limit = int(min(max(2 * weight_bytes + 2 * act_bytes + (4 << 20), 32 << 20),
                         96 << 20))

    kernel = functools.partial(encoder_layer_kernel, n_heads=n_heads, eps=eps,
                               matmul_dtype=matmul_dtype)

    return pl.pallas_call(
        kernel,
        out_shape=jax.ShapeDtypeStruct((B, S, H), x.dtype),
        grid=grid,
        in_specs=in_specs,
        out_specs=out_spec,
        scratch_shapes=[pltpu.VMEM((tq, H), jnp.float32)],     # per-tile attention context
        compiler_params=pltpu.CompilerParams(
            dimension_semantics=("parallel", "parallel"),
            vmem_limit_bytes=vmem_limit),
    )(x, x, *weights)


def make_params(key, hid_dim, pf_dim):
    ks = jax.random.split(key, 8)
    s = 0.1

    def mat(k, shape):
        return s * jax.random.normal(k, shape, jnp.float32)

    params = {
        # SelfAttention linears (PyTorch nn.Linear: W [out, in], b [out])
        "wq": mat(ks[0], (hid_dim, hid_dim)), "bq": mat(ks[1], (hid_dim,)).reshape(1, hid_dim),
        "wk": mat(ks[2], (hid_dim, hid_dim)), "bk": mat(ks[3], (hid_dim,)).reshape(1, hid_dim),
        "wv": mat(ks[4], (hid_dim, hid_dim)), "bv": mat(ks[5], (hid_dim,)).reshape(1, hid_dim),
        "wo": mat(ks[6], (hid_dim, hid_dim)), "bo": mat(ks[7], (hid_dim,)).reshape(1, hid_dim),
        # LayerNorm 1 / 2
        "g1": jnp.ones((1, hid_dim), jnp.float32), "be1": jnp.zeros((1, hid_dim), jnp.float32),
        "g2": jnp.ones((1, hid_dim), jnp.float32), "be2": jnp.zeros((1, hid_dim), jnp.float32),
        # Feed-forward (Conv1d k=1 squeezed to [out, in])
        "w1": mat(jax.random.fold_in(key, 100), (pf_dim, hid_dim)),
        "b1": mat(jax.random.fold_in(key, 101), (pf_dim,)).reshape(1, pf_dim),
        "w2": mat(jax.random.fold_in(key, 102), (hid_dim, pf_dim)),
        "b2": mat(jax.random.fold_in(key, 103), (hid_dim,)).reshape(1, hid_dim),
    }
    return params


def encoder_layer_reference(x, params, *, n_heads, eps=1e-12):
    """Pure-JAX f32 reference matching the PyTorch module's forward (mask=None, eval)."""
    def ln(t, g, b):
        mean = jnp.mean(t, axis=-1, keepdims=True)
        d = t - mean
        var = jnp.sum(d * d, axis=-1, keepdims=True) / (t.shape[-1] - 1)
        return g * (d / (jnp.sqrt(var) + eps)) + b

    B, S, H = x.shape
    hd = H // n_heads
    q = x @ params["wq"].T + params["bq"]
    k = x @ params["wk"].T + params["bk"]
    v = x @ params["wv"].T + params["bv"]
    q = q.reshape(B, S, n_heads, hd).transpose(0, 2, 1, 3)
    k = k.reshape(B, S, n_heads, hd).transpose(0, 2, 1, 3)
    v = v.reshape(B, S, n_heads, hd).transpose(0, 2, 1, 3)
    e = jnp.einsum("bhqd,bhkd->bhqk", q, k) / math.sqrt(hd)
    a = jax.nn.softmax(e, axis=-1)
    ctx = jnp.einsum("bhqk,bhkd->bhqd", a, v).transpose(0, 2, 1, 3).reshape(B, S, H)
    sa = ctx @ params["wo"].T + params["bo"]
    t1 = ln(x + sa, params["g1"], params["be1"])
    h1 = jax.nn.relu(t1 @ params["w1"].T + params["b1"])
    h2 = h1 @ params["w2"].T + params["b2"]
    return ln(t1 + h2, params["g2"], params["be2"])


if __name__ == "__main__":
    B, S, H, NH, PF = 2, 8, 32, 4, 64
    key = jax.random.PRNGKey(0)
    kx, kp = jax.random.split(key)
    x = jax.random.normal(kx, (B, S, H), jnp.float32)
    params = make_params(kp, H, PF)

    out = encoder_layer(x, params, n_heads=NH)
    jax.block_until_ready(out)
    assert out.shape == (B, S, H)

    ref = encoder_layer_reference(x, params, n_heads=NH)
    err = float(jnp.max(jnp.abs(out - ref)))
    assert err < 1e-1, f"max abs error vs reference too large: {err}"

    print("KERNEL_OK")
</pallas_src>

<mosaic_0001>
module attributes {stable_mosaic.version = 11 : i64} {
  func.func @encoder_layer_kernel(%arg0: i32, %arg1: i32, %arg2: memref<1x8x32xf32, #tpu.memory_space<vmem>>, %arg3: memref<1x8x32xf32, #tpu.memory_space<vmem>>, %arg4: memref<32x32xbf16, #tpu.memory_space<vmem>>, %arg5: memref<1x32xf32, #tpu.memory_space<vmem>>, %arg6: memref<32x64xbf16, #tpu.memory_space<vmem>>, %arg7: memref<1x64xf32, #tpu.memory_space<vmem>>, %arg8: memref<32x32xbf16, #tpu.memory_space<vmem>>, %arg9: memref<1x32xf32, #tpu.memory_space<vmem>>, %arg10: memref<1x32xf32, #tpu.memory_space<vmem>>, %arg11: memref<1x32xf32, #tpu.memory_space<vmem>>, %arg12: memref<32x64xbf16, #tpu.memory_space<vmem>>, %arg13: memref<1x64xf32, #tpu.memory_space<vmem>>, %arg14: memref<64x32xbf16, #tpu.memory_space<vmem>>, %arg15: memref<1x32xf32, #tpu.memory_space<vmem>>, %arg16: memref<1x32xf32, #tpu.memory_space<vmem>>, %arg17: memref<1x32xf32, #tpu.memory_space<vmem>>, %arg18: memref<1x8x32xf32, #tpu.memory_space<vmem>>, %arg19: memref<8x32xf32, #tpu.memory_space<vmem>>) attributes {dimension_semantics = [#tpu.dimension_semantics<parallel>, #tpu.dimension_semantics<parallel>], iteration_bounds = array<i64: 2, 1>, scalar_prefetch = 0 : i64, scratch_operands = 1 : i64, tpu.core_type = #tpu.core_type<tc>, window_params = [{transform_indices = @transform_0, window_bounds = array<i64: 1, 8, 32>}, {transform_indices = @transform_1, window_bounds = array<i64: 1, 8, 32>}, {pipeline_mode = #tpu.pipeline_mode<synchronous>, transform_indices = @transform_2, window_bounds = array<i64: 32, 32>}, {pipeline_mode = #tpu.pipeline_mode<synchronous>, transform_indices = @transform_3, window_bounds = array<i64: 1, 32>}, {pipeline_mode = #tpu.pipeline_mode<synchronous>, transform_indices = @transform_4, window_bounds = array<i64: 32, 64>}, {pipeline_mode = #tpu.pipeline_mode<synchronous>, transform_indices = @transform_5, window_bounds = array<i64: 1, 64>}, {pipeline_mode = #tpu.pipeline_mode<synchronous>, transform_indices = @transform_6, window_bounds = array<i64: 32, 32>}, {pipeline_mode = #tpu.pipeline_mode<synchronous>, transform_indices = @transform_7, window_bounds = array<i64: 1, 32>}, {pipeline_mode = #tpu.pipeline_mode<synchronous>, transform_indices = @transform_8, window_bounds = array<i64: 1, 32>}, {pipeline_mode = #tpu.pipeline_mode<synchronous>, transform_indices = @transform_9, window_bounds = array<i64: 1, 32>}, {pipeline_mode = #tpu.pipeline_mode<synchronous>, transform_indices = @transform_10, window_bounds = array<i64: 32, 64>}, {pipeline_mode = #tpu.pipeline_mode<synchronous>, transform_indices = @transform_11, window_bounds = array<i64: 1, 64>}, {pipeline_mode = #tpu.pipeline_mode<synchronous>, transform_indices = @transform_12, window_bounds = array<i64: 64, 32>}, {pipeline_mode = #tpu.pipeline_mode<synchronous>, transform_indices = @transform_13, window_bounds = array<i64: 1, 32>}, {pipeline_mode = #tpu.pipeline_mode<synchronous>, transform_indices = @transform_14, window_bounds = array<i64: 1, 32>}, {pipeline_mode = #tpu.pipeline_mode<synchronous>, transform_indices = @transform_15, window_bounds = array<i64: 1, 32>}, {transform_indices = @transform_16, window_bounds = array<i64: 1, 8, 32>}]} {
    %c0 = arith.constant 0 : index
    %c0_0 = arith.constant 0 : index
    %c0_1 = arith.constant 0 : index
    %0 = vector.load %arg2[%c0, %c0_0, %c0_1] : memref<1x8x32xf32, #tpu.memory_space<vmem>>, vector<1x8x32xf32>
    %1 = vector.shape_cast %0 : vector<1x8x32xf32> to vector<8x32xf32>
    %2 = arith.truncf %1 : vector<8x32xf32> to vector<8x32xbf16>
    %c0_2 = arith.constant 0 : index
    %c0_3 = arith.constant 0 : index
    %c0_4 = arith.constant 0 : index
    %3 = vector.load %arg3[%c0_2, %c0_3, %c0_4] : memref<1x8x32xf32, #tpu.memory_space<vmem>>, vector<1x8x32xf32>
    %4 = vector.shape_cast %3 : vector<1x8x32xf32> to vector<8x32xf32>
    %5 = arith.truncf %4 : vector<8x32xf32> to vector<8x32xbf16>
    %c0_5 = arith.constant 0 : index
    %c0_6 = arith.constant 0 : index
    %6 = vector.load %arg4[%c0_5, %c0_6] : memref<32x32xbf16, #tpu.memory_space<vmem>>, vector<32x32xbf16>
    %cst = arith.constant dense<0.000000e+00> : vector<8x32xf32>
    %7 = tpu.matmul %2, %6, %cst {dimension_numbers = #tpu.dot_dimension_numbers<[1], [0], [0], [1], [0, 0, 1, 1], [], []>} : vector<8x32xbf16>, vector<32x32xbf16>, vector<8x32xf32> -> vector<8x32xf32>
    %c0_7 = arith.constant 0 : index
    %c0_8 = arith.constant 0 : index
    %8 = vector.load %arg5[%c0_7, %c0_8] : memref<1x32xf32, #tpu.memory_space<vmem>>, vector<1x32xf32>
    %9 = vector.broadcast %8 : vector<1x32xf32> to vector<8x32xf32>
    %10 = arith.addf %7, %9 : vector<8x32xf32>
    %c0_9 = arith.constant 0 : index
    %c0_10 = arith.constant 0 : index
    %11 = vector.load %arg6[%c0_9, %c0_10] : memref<32x64xbf16, #tpu.memory_space<vmem>>, vector<32x64xbf16>
    %cst_11 = arith.constant dense<0.000000e+00> : vector<8x64xf32>
    %12 = tpu.matmul %5, %11, %cst_11 {dimension_numbers = #tpu.dot_dimension_numbers<[1], [0], [0], [1], [0, 0, 1, 1], [], []>} : vector<8x32xbf16>, vector<32x64xbf16>, vector<8x64xf32> -> vector<8x64xf32>
    %c0_12 = arith.constant 0 : index
    %c0_13 = arith.constant 0 : index
    %13 = vector.load %arg7[%c0_12, %c0_13] : memref<1x64xf32, #tpu.memory_space<vmem>>, vector<1x64xf32>
    %14 = vector.broadcast %13 : vector<1x64xf32> to vector<8x64xf32>
    %15 = arith.addf %12, %14 : vector<8x64xf32>
    %16 = vector.extract_strided_slice %15 {offsets = [0, 0], sizes = [8, 32], strides = [1, 1]} : vector<8x64xf32> to vector<8x32xf32>
    %17 = vector.extract_strided_slice %15 {offsets = [0, 32], sizes = [8, 32], strides = [1, 1]} : vector<8x64xf32> to vector<8x32xf32>
    %18 = vector.extract_strided_slice %10 {offsets = [0, 0], sizes = [8, 8], strides = [1, 1]} : vector<8x32xf32> to vector<8x8xf32>
    %19 = arith.truncf %18 : vector<8x8xf32> to vector<8x8xbf16>
    %20 = vector.extract_strided_slice %16 {offsets = [0, 0], sizes = [8, 8], strides = [1, 1]} : vector<8x32xf32> to vector<8x8xf32>
    %21 = arith.truncf %20 : vector<8x8xf32> to vector<8x8xbf16>
    %22 = vector.extract_strided_slice %17 {offsets = [0, 0], sizes = [8, 8], strides = [1, 1]} : vector<8x32xf32> to vector<8x8xf32>
    %23 = arith.truncf %22 : vector<8x8xf32> to vector<8x8xbf16>
    %cst_14 = arith.constant dense<0.000000e+00> : vector<8x8xf32>
    %24 = tpu.matmul %19, %21, %cst_14 {dimension_numbers = #tpu.dot_dimension_numbers<[1], [1], [0], [0], [0, 0, 1, 0], [], []>} : vector<8x8xbf16>, vector<8x8xbf16>, vector<8x8xf32> -> vector<8x8xf32>
    %cst_15 = arith.constant 0.353553385 : f32
    %25 = vector.broadcast %cst_15 : f32 to vector<8x8xf32>
    %26 = arith.mulf %24, %25 : vector<8x8xf32>
    %cst_16 = arith.constant dense<0xFF800000> : vector<8xf32>
    %27 = vector.multi_reduction <maximumf>, %26, %cst_16 [1] : vector<8x8xf32> to vector<8xf32>
    %28 = vector.shape_cast %27 : vector<8xf32> to vector<8x1xf32>
    %29 = vector.broadcast %28 : vector<8x1xf32> to vector<8x8xf32>
    %30 = arith.subf %26, %29 : vector<8x8xf32>
    %31 = math.exp %30 : vector<8x8xf32>
    %cst_17 = arith.constant dense<0.000000e+00> : vector<8xf32>
    %32 = vector.multi_reduction <add>, %31, %cst_17 [1] : vector<8x8xf32> to vector<8xf32>
    %33 = vector.shape_cast %32 : vector<8xf32> to vector<8x1xf32>
    %34 = tpu.reciprocal %33 {approx = true} : vector<8x1xf32> -> vector<8x1xf32>
    %35 = vector.broadcast %34 : vector<8x1xf32> to vector<8x8xf32>
    %36 = arith.mulf %31, %35 : vector<8x8xf32>
    %37 = arith.truncf %36 : vector<8x8xf32> to vector<8x8xbf16>
    %cst_18 = arith.constant dense<0.000000e+00> : vector<8x8xf32>
    %38 = tpu.matmul %37, %23, %cst_18 {dimension_numbers = #tpu.dot_dimension_numbers<[1], [0], [0], [1], [0, 0, 1, 1], [], []>} : vector<8x8xbf16>, vector<8x8xbf16>, vector<8x8xf32> -> vector<8x8xf32>
    %c0_19 = arith.constant 0 : index
    %c0_20 = arith.constant 0 : index
    %39 = vector.load %arg19[%c0_19, %c0_20] : memref<8x32xf32, #tpu.memory_space<vmem>>, vector<8x8xf32>
    tpu.vector_store %arg19[%c0_19, %c0_20], %38 {strides = array<i32>} : memref<8x32xf32, #tpu.memory_space<vmem>>, vector<8x8xf32>,
    %40 = vector.extract_strided_slice %10 {offsets = [0, 8], sizes = [8, 8], strides = [1, 1]} : vector<8x32xf32> to vector<8x8xf32>
    %41 = arith.truncf %40 : vector<8x8xf32> to vector<8x8xbf16>
    %42 = vector.extract_strided_slice %16 {offsets = [0, 8], sizes = [8, 8], strides = [1, 1]} : vector<8x32xf32> to vector<8x8xf32>
    %43 = arith.truncf %42 : vector<8x8xf32> to vector<8x8xbf16>
    %44 = vector.extract_strided_slice %17 {offsets = [0, 8], sizes = [8, 8], strides = [1, 1]} : vector<8x32xf32> to vector<8x8xf32>
    %45 = arith.truncf %44 : vector<8x8xf32> to vector<8x8xbf16>
    %cst_21 = arith.constant dense<0.000000e+00> : vector<8x8xf32>
    %46 = tpu.matmul %41, %43, %cst_21 {dimension_numbers = #tpu.dot_dimension_numbers<[1], [1], [0], [0], [0, 0, 1, 0], [], []>} : vector<8x8xbf16>, vector<8x8xbf16>, vector<8x8xf32> -> vector<8x8xf32>
    %cst_22 = arith.constant 0.353553385 : f32
    %47 = vector.broadcast %cst_22 : f32 to vector<8x8xf32>
    %48 = arith.mulf %46, %47 : vector<8x8xf32>
    %cst_23 = arith.constant dense<0xFF800000> : vector<8xf32>
    %49 = vector.multi_reduction <maximumf>, %48, %cst_23 [1] : vector<8x8xf32> to vector<8xf32>
    %50 = vector.shape_cast %49 : vector<8xf32> to vector<8x1xf32>
    %51 = vector.broadcast %50 : vector<8x1xf32> to vector<8x8xf32>
    %52 = arith.subf %48, %51 : vector<8x8xf32>
    %53 = math.exp %52 : vector<8x8xf32>
    %cst_24 = arith.constant dense<0.000000e+00> : vector<8xf32>
    %54 = vector.multi_reduction <add>, %53, %cst_24 [1] : vector<8x8xf32> to vector<8xf32>
    %55 = vector.shape_cast %54 : vector<8xf32> to vector<8x1xf32>
    %56 = tpu.reciprocal %55 {approx = true} : vector<8x1xf32> -> vector<8x1xf32>
    %57 = vector.broadcast %56 : vector<8x1xf32> to vector<8x8xf32>
    %58 = arith.mulf %53, %57 : vector<8x8xf32>
    %59 = arith.truncf %58 : vector<8x8xf32> to vector<8x8xbf16>
    %cst_25 = arith.constant dense<0.000000e+00> : vector<8x8xf32>
    %60 = tpu.matmul %59, %45, %cst_25 {dimension_numbers = #tpu.dot_dimension_numbers<[1], [0], [0], [1], [0, 0, 1, 1], [], []>} : vector<8x8xbf16>, vector<8x8xbf16>, vector<8x8xf32> -> vector<8x8xf32>
    %c0_26 = arith.constant 0 : index
    %c8 = arith.constant 8 : index
    %61 = vector.load %arg19[%c0_26, %c8] : memref<8x32xf32, #tpu.memory_space<vmem>>, vector<8x8xf32>
    tpu.vector_store %arg19[%c0_26, %c8], %60 {strides = array<i32>} : memref<8x32xf32, #tpu.memory_space<vmem>>, vector<8x8xf32>,
    %62 = vector.extract_strided_slice %10 {offsets = [0, 16], sizes = [8, 8], strides = [1, 1]} : vector<8x32xf32> to vector<8x8xf32>
    %63 = arith.truncf %62 : vector<8x8xf32> to vector<8x8xbf16>
    %64 = vector.extract_strided_slice %16 {offsets = [0, 16], sizes = [8, 8], strides = [1, 1]} : vector<8x32xf32> to vector<8x8xf32>
    %65 = arith.truncf %64 : vector<8x8xf32> to vector<8x8xbf16>
    %66 = vector.extract_strided_slice %17 {offsets = [0, 16], sizes = [8, 8], strides = [1, 1]} : vector<8x32xf32> to vector<8x8xf32>
    %67 = arith.truncf %66 : vector<8x8xf32> to vector<8x8xbf16>
    %cst_27 = arith.constant dense<0.000000e+00> : vector<8x8xf32>
    %68 = tpu.matmul %63, %65, %cst_27 {dimension_numbers = #tpu.dot_dimension_numbers<[1], [1], [0], [0], [0, 0, 1, 0], [], []>} : vector<8x8xbf16>, vector<8x8xbf16>, vector<8x8xf32> -> vector<8x8xf32>
    %cst_28 = arith.constant 0.353553385 : f32
    %69 = vector.broadcast %cst_28 : f32 to vector<8x8xf32>
    %70 = arith.mulf %68, %69 : vector<8x8xf32>
    %cst_29 = arith.constant dense<0xFF800000> : vector<8xf32>
    %71 = vector.multi_reduction <maximumf>, %70, %cst_29 [1] : vector<8x8xf32> to vector<8xf32>
    %72 = vector.shape_cast %71 : vector<8xf32> to vector<8x1xf32>
    %73 = vector.broadcast %72 : vector<8x1xf32> to vector<8x8xf32>
    %74 = arith.subf %70, %73 : vector<8x8xf32>
    %75 = math.exp %74 : vector<8x8xf32>
    %cst_30 = arith.constant dense<0.000000e+00> : vector<8xf32>
    %76 = vector.multi_reduction <add>, %75, %cst_30 [1] : vector<8x8xf32> to vector<8xf32>
    %77 = vector.shape_cast %76 : vector<8xf32> to vector<8x1xf32>
    %78 = tpu.reciprocal %77 {approx = true} : vector<8x1xf32> -> vector<8x1xf32>
    %79 = vector.broadcast %78 : vector<8x1xf32> to vector<8x8xf32>
    %80 = arith.mulf %75, %79 : vector<8x8xf32>
    %81 = arith.truncf %80 : vector<8x8xf32> to vector<8x8xbf16>
    %cst_31 = arith.constant dense<0.000000e+00> : vector<8x8xf32>
    %82 = tpu.matmul %81, %67, %cst_31 {dimension_numbers = #tpu.dot_dimension_numbers<[1], [0], [0], [1], [0, 0, 1, 1], [], []>} : vector<8x8xbf16>, vector<8x8xbf16>, vector<8x8xf32> -> vector<8x8xf32>
    %c0_32 = arith.constant 0 : index
    %c16 = arith.constant 16 : index
    %83 = vector.load %arg19[%c0_32, %c16] : memref<8x32xf32, #tpu.memory_space<vmem>>, vector<8x8xf32>
    tpu.vector_store %arg19[%c0_32, %c16], %82 {strides = array<i32>} : memref<8x32xf32, #tpu.memory_space<vmem>>, vector<8x8xf32>,
    %84 = vector.extract_strided_slice %10 {offsets = [0, 24], sizes = [8, 8], strides = [1, 1]} : vector<8x32xf32> to vector<8x8xf32>
    %85 = arith.truncf %84 : vector<8x8xf32> to vector<8x8xbf16>
    %86 = vector.extract_strided_slice %16 {offsets = [0, 24], sizes = [8, 8], strides = [1, 1]} : vector<8x32xf32> to vector<8x8xf32>
    %87 = arith.truncf %86 : vector<8x8xf32> to vector<8x8xbf16>
    %88 = vector.extract_strided_slice %17 {offsets = [0, 24], sizes = [8, 8], strides = [1, 1]} : vector<8x32xf32> to vector<8x8xf32>
    %89 = arith.truncf %88 : vector<8x8xf32> to vector<8x8xbf16>
    %cst_33 = arith.constant dense<0.000000e+00> : vector<8x8xf32>
    %90 = tpu.matmul %85, %87, %cst_33 {dimension_numbers = #tpu.dot_dimension_numbers<[1], [1], [0], [0], [0, 0, 1, 0], [], []>} : vector<8x8xbf16>, vector<8x8xbf16>, vector<8x8xf32> -> vector<8x8xf32>
    %cst_34 = arith.constant 0.353553385 : f32
    %91 = vector.broadcast %cst_34 : f32 to vector<8x8xf32>
    %92 = arith.mulf %90, %91 : vector<8x8xf32>
    %cst_35 = arith.constant dense<0xFF800000> : vector<8xf32>
    %93 = vector.multi_reduction <maximumf>, %92, %cst_35 [1] : vector<8x8xf32> to vector<8xf32>
    %94 = vector.shape_cast %93 : vector<8xf32> to vector<8x1xf32>
    %95 = vector.broadcast %94 : vector<8x1xf32> to vector<8x8xf32>
    %96 = arith.subf %92, %95 : vector<8x8xf32>
    %97 = math.exp %96 : vector<8x8xf32>
    %cst_36 = arith.constant dense<0.000000e+00> : vector<8xf32>
    %98 = vector.multi_reduction <add>, %97, %cst_36 [1] : vector<8x8xf32> to vector<8xf32>
    %99 = vector.shape_cast %98 : vector<8xf32> to vector<8x1xf32>
    %100 = tpu.reciprocal %99 {approx = true} : vector<8x1xf32> -> vector<8x1xf32>
    %101 = vector.broadcast %100 : vector<8x1xf32> to vector<8x8xf32>
    %102 = arith.mulf %97, %101 : vector<8x8xf32>
    %103 = arith.truncf %102 : vector<8x8xf32> to vector<8x8xbf16>
    %cst_37 = arith.constant dense<0.000000e+00> : vector<8x8xf32>
    %104 = tpu.matmul %103, %89, %cst_37 {dimension_numbers = #tpu.dot_dimension_numbers<[1], [0], [0], [1], [0, 0, 1, 1], [], []>} : vector<8x8xbf16>, vector<8x8xbf16>, vector<8x8xf32> -> vector<8x8xf32>
    %c0_38 = arith.constant 0 : index
    %c24 = arith.constant 24 : index
    %105 = vector.load %arg19[%c0_38, %c24] : memref<8x32xf32, #tpu.memory_space<vmem>>, vector<8x8xf32>
    tpu.vector_store %arg19[%c0_38, %c24], %104 {strides = array<i32>} : memref<8x32xf32, #tpu.memory_space<vmem>>, vector<8x8xf32>,
    %c0_39 = arith.constant 0 : index
    %c0_40 = arith.constant 0 : index
    %106 = vector.load %arg19[%c0_39, %c0_40] : memref<8x32xf32, #tpu.memory_space<vmem>>, vector<8x32xf32>
    %107 = arith.truncf %106 : vector<8x32xf32> to vector<8x32xbf16>
    %c0_41 = arith.constant 0 : index
    %c0_42 = arith.constant 0 : index
    %108 = vector.load %arg8[%c0_41, %c0_42] : memref<32x32xbf16, #tpu.memory_space<vmem>>, vector<32x32xbf16>
    %cst_43 = arith.constant dense<0.000000e+00> : vector<8x32xf32>
    %109 = tpu.matmul %107, %108, %cst_43 {dimension_numbers = #tpu.dot_dimension_numbers<[1], [0], [0], [1], [0, 0, 1, 1], [], []>} : vector<8x32xbf16>, vector<32x32xbf16>, vector<8x32xf32> -> vector<8x32xf32>
    %c0_44 = arith.constant 0 : index
    %c0_45 = arith.constant 0 : index
    %110 = vector.load %arg9[%c0_44, %c0_45] : memref<1x32xf32, #tpu.memory_space<vmem>>, vector<1x32xf32>
    %111 = vector.broadcast %110 : vector<1x32xf32> to vector<8x32xf32>
    %112 = arith.addf %109, %111 : vector<8x32xf32>
    %113 = arith.addf %1, %112 : vector<8x32xf32>
    %c0_46 = arith.constant 0 : index
    %c0_47 = arith.constant 0 : index
    %114 = vector.load %arg10[%c0_46, %c0_47] : memref<1x32xf32, #tpu.memory_space<vmem>>, vector<1x32xf32>
    %c0_48 = arith.constant 0 : index
    %c0_49 = arith.constant 0 : index
    %115 = vector.load %arg11[%c0_48, %c0_49] : memref<1x32xf32, #tpu.memory_space<vmem>>, vector<1x32xf32>
    %cst_50 = arith.constant dense<0.000000e+00> : vector<8xf32>
    %116 = vector.multi_reduction <add>, %113, %cst_50 [1] : vector<8x32xf32> to vector<8xf32>
    %117 = vector.shape_cast %116 : vector<8xf32> to vector<8x1xf32>
    %cst_51 = arith.constant 3.200000e+01 : f32
    %118 = vector.broadcast %cst_51 : f32 to vector<8x1xf32>
    %119 = arith.divf %117, %118 : vector<8x1xf32>
    %120 = vector.broadcast %119 : vector<8x1xf32> to vector<8x32xf32>
    %121 = arith.subf %113, %120 : vector<8x32xf32>
    %122 = arith.mulf %121, %121 : vector<8x32xf32>
    %cst_52 = arith.constant dense<0.000000e+00> : vector<8xf32>
    %123 = vector.multi_reduction <add>, %122, %cst_52 [1] : vector<8x32xf32> to vector<8xf32>
    %124 = vector.shape_cast %123 : vector<8xf32> to vector<8x1xf32>
    %cst_53 = arith.constant 0.0322580636 : f32
    %125 = vector.broadcast %cst_53 : f32 to vector<8x1xf32>
    %126 = arith.mulf %124, %125 : vector<8x1xf32>
    %127 = math.sqrt %126 : vector<8x1xf32>
    %cst_54 = arith.constant 9.99999996E-13 : f32
    %128 = vector.broadcast %cst_54 : f32 to vector<8x1xf32>
    %129 = arith.addf %127, %128 : vector<8x1xf32>
    %130 = tpu.reciprocal %129 {approx = true} : vector<8x1xf32> -> vector<8x1xf32>
    %131 = vector.broadcast %130 : vector<8x1xf32> to vector<8x32xf32>
    %132 = arith.mulf %121, %131 : vector<8x32xf32>
    %133 = vector.broadcast %114 : vector<1x32xf32> to vector<8x32xf32>
    %134 = arith.mulf %133, %132 : vector<8x32xf32>
    %135 = vector.broadcast %115 : vector<1x32xf32> to vector<8x32xf32>
    %136 = arith.addf %134, %135 : vector<8x32xf32>
    %137 = arith.truncf %136 : vector<8x32xf32> to vector<8x32xbf16>
    %c0_55 = arith.constant 0 : index
    %c0_56 = arith.constant 0 : index
    %138 = vector.load %arg12[%c0_55, %c0_56] : memref<32x64xbf16, #tpu.memory_space<vmem>>, vector<32x64xbf16>
    %cst_57 = arith.constant dense<0.000000e+00> : vector<8x64xf32>
    %139 = tpu.matmul %137, %138, %cst_57 {dimension_numbers = #tpu.dot_dimension_numbers<[1], [0], [0], [1], [0, 0, 1, 1], [], []>} : vector<8x32xbf16>, vector<32x64xbf16>, vector<8x64xf32> -> vector<8x64xf32>
    %c0_58 = arith.constant 0 : index
    %c0_59 = arith.constant 0 : index
    %140 = vector.load %arg13[%c0_58, %c0_59] : memref<1x64xf32, #tpu.memory_space<vmem>>, vector<1x64xf32>
    %141 = vector.broadcast %140 : vector<1x64xf32> to vector<8x64xf32>
    %142 = arith.addf %139, %141 : vector<8x64xf32>
    %cst_60 = arith.constant 0.000000e+00 : f32
    %143 = vector.broadcast %cst_60 : f32 to vector<8x64xf32>
    %144 = arith.maximumf %142, %143 : vector<8x64xf32>
    %145 = arith.truncf %144 : vector<8x64xf32> to vector<8x64xbf16>
    %c0_61 = arith.constant 0 : index
    %c0_62 = arith.constant 0 : index
    %146 = vector.load %arg14[%c0_61, %c0_62] : memref<64x32xbf16, #tpu.memory_space<vmem>>, vector<64x32xbf16>
    %cst_63 = arith.constant dense<0.000000e+00> : vector<8x32xf32>
    %147 = tpu.matmul %145, %146, %cst_63 {dimension_numbers = #tpu.dot_dimension_numbers<[1], [0], [0], [1], [0, 0, 1, 1], [], []>} : vector<8x64xbf16>, vector<64x32xbf16>, vector<8x32xf32> -> vector<8x32xf32>
    %c0_64 = arith.constant 0 : index
    %c0_65 = arith.constant 0 : index
    %148 = vector.load %arg15[%c0_64, %c0_65] : memref<1x32xf32, #tpu.memory_space<vmem>>, vector<1x32xf32>
    %149 = vector.broadcast %148 : vector<1x32xf32> to vector<8x32xf32>
    %150 = arith.addf %147, %149 : vector<8x32xf32>
    %151 = arith.addf %136, %150 : vector<8x32xf32>
    %c0_66 = arith.constant 0 : index
    %c0_67 = arith.constant 0 : index
    %152 = vector.load %arg16[%c0_66, %c0_67] : memref<1x32xf32, #tpu.memory_space<vmem>>, vector<1x32xf32>
    %c0_68 = arith.constant 0 : index
    %c0_69 = arith.constant 0 : index
    %153 = vector.load %arg17[%c0_68, %c0_69] : memref<1x32xf32, #tpu.memory_space<vmem>>, vector<1x32xf32>
    %cst_70 = arith.constant dense<0.000000e+00> : vector<8xf32>
    %154 = vector.multi_reduction <add>, %151, %cst_70 [1] : vector<8x32xf32> to vector<8xf32>
    %155 = vector.shape_cast %154 : vector<8xf32> to vector<8x1xf32>
    %cst_71 = arith.constant 3.200000e+01 : f32
    %156 = vector.broadcast %cst_71 : f32 to vector<8x1xf32>
    %157 = arith.divf %155, %156 : vector<8x1xf32>
    %158 = vector.broadcast %157 : vector<8x1xf32> to vector<8x32xf32>
    %159 = arith.subf %151, %158 : vector<8x32xf32>
    %160 = arith.mulf %159, %159 : vector<8x32xf32>
    %cst_72 = arith.constant dense<0.000000e+00> : vector<8xf32>
    %161 = vector.multi_reduction <add>, %160, %cst_72 [1] : vector<8x32xf32> to vector<8xf32>
    %162 = vector.shape_cast %161 : vector<8xf32> to vector<8x1xf32>
    %cst_73 = arith.constant 0.0322580636 : f32
    %163 = vector.broadcast %cst_73 : f32 to vector<8x1xf32>
    %164 = arith.mulf %162, %163 : vector<8x1xf32>
    %165 = math.sqrt %164 : vector<8x1xf32>
    %cst_74 = arith.constant 9.99999996E-13 : f32
    %166 = vector.broadcast %cst_74 : f32 to vector<8x1xf32>
    %167 = arith.addf %165, %166 : vector<8x1xf32>
    %168 = tpu.reciprocal %167 {approx = true} : vector<8x1xf32> -> vector<8x1xf32>
    %169 = vector.broadcast %168 : vector<8x1xf32> to vector<8x32xf32>
    %170 = arith.mulf %159, %169 : vector<8x32xf32>
    %171 = vector.broadcast %152 : vector<1x32xf32> to vector<8x32xf32>
    %172 = arith.mulf %171, %170 : vector<8x32xf32>
    %173 = vector.broadcast %153 : vector<1x32xf32> to vector<8x32xf32>
    %174 = arith.addf %172, %173 : vector<8x32xf32>
    %c0_75 = arith.constant 0 : index
    %c0_76 = arith.constant 0 : index
    %c0_77 = arith.constant 0 : index
    %175 = vector.load %arg18[%c0_75, %c0_76, %c0_77] : memref<1x8x32xf32, #tpu.memory_space<vmem>>, vector<1x8x32xf32>
    %176 = vector.shape_cast %175 : vector<1x8x32xf32> to vector<8x32xf32>
    %177 = vector.shape_cast %174 : vector<8x32xf32> to vector<1x8x32xf32>
    tpu.vector_store %arg18[%c0_75, %c0_76, %c0_77], %177 {strides = array<i32>} : memref<1x8x32xf32, #tpu.memory_space<vmem>>, vector<1x8x32xf32>,
    return
  }
  func.func @transform_0(%arg0: i32, %arg1: i32) -> (i32, i32, i32) {
    %c0_i32 = arith.constant 0 : i32
    %c0_i32_0 = arith.constant 0 : i32
    return %arg0, %arg1, %c0_i32 : i32, i32, i32
  }
  func.func @transform_1(%arg0: i32, %arg1: i32) -> (i32, i32, i32) {
    %c0_i32 = arith.constant 0 : i32
    %c0_i32_0 = arith.constant 0 : i32
    %c0_i32_1 = arith.constant 0 : i32
    return %arg0, %c0_i32, %c0_i32_0 : i32, i32, i32
  }
  func.func @transform_2(%arg0: i32, %arg1: i32) -> (i32, i32) {
    %c0_i32 = arith.constant 0 : i32
    %c0_i32_0 = arith.constant 0 : i32
    %c0_i32_1 = arith.constant 0 : i32
    return %c0_i32, %c0_i32_0 : i32, i32
  }
  func.func @transform_3(%arg0: i32, %arg1: i32) -> (i32, i32) {
    %c0_i32 = arith.constant 0 : i32
    %c0_i32_0 = arith.constant 0 : i32
    %c0_i32_1 = arith.constant 0 : i32
    return %c0_i32, %c0_i32_0 : i32, i32
  }
  func.func @transform_4(%arg0: i32, %arg1: i32) -> (i32, i32) {
    %c0_i32 = arith.constant 0 : i32
    %c0_i32_0 = arith.constant 0 : i32
    %c0_i32_1 = arith.constant 0 : i32
    return %c0_i32, %c0_i32_0 : i32, i32
  }
  func.func @transform_5(%arg0: i32, %arg1: i32) -> (i32, i32) {
    %c0_i32 = arith.constant 0 : i32
    %c0_i32_0 = arith.constant 0 : i32
    %c0_i32_1 = arith.constant 0 : i32
    return %c0_i32, %c0_i32_0 : i32, i32
  }
  func.func @transform_6(%arg0: i32, %arg1: i32) -> (i32, i32) {
    %c0_i32 = arith.constant 0 : i32
    %c0_i32_0 = arith.constant 0 : i32
    %c0_i32_1 = arith.constant 0 : i32
    return %c0_i32, %c0_i32_0 : i32, i32
  }
  func.func @transform_7(%arg0: i32, %arg1: i32) -> (i32, i32) {
    %c0_i32 = arith.constant 0 : i32
    %c0_i32_0 = arith.constant 0 : i32
    %c0_i32_1 = arith.constant 0 : i32
    return %c0_i32, %c0_i32_0 : i32, i32
  }
  func.func @transform_8(%arg0: i32, %arg1: i32) -> (i32, i32) {
    %c0_i32 = arith.constant 0 : i32
    %c0_i32_0 = arith.constant 0 : i32
    %c0_i32_1 = arith.constant 0 : i32
    return %c0_i32, %c0_i32_0 : i32, i32
  }
  func.func @transform_9(%arg0: i32, %arg1: i32) -> (i32, i32) {
    %c0_i32 = arith.constant 0 : i32
    %c0_i32_0 = arith.constant 0 : i32
    %c0_i32_1 = arith.constant 0 : i32
    return %c0_i32, %c0_i32_0 : i32, i32
  }
  func.func @transform_10(%arg0: i32, %arg1: i32) -> (i32, i32) {
    %c0_i32 = arith.constant 0 : i32
    %c0_i32_0 = arith.constant 0 : i32
    %c0_i32_1 = arith.constant 0 : i32
    return %c0_i32, %c0_i32_0 : i32, i32
  }
  func.func @transform_11(%arg0: i32, %arg1: i32) -> (i32, i32) {
    %c0_i32 = arith.constant 0 : i32
    %c0_i32_0 = arith.constant 0 : i32
    %c0_i32_1 = arith.constant 0 : i32
    return %c0_i32, %c0_i32_0 : i32, i32
  }
  func.func @transform_12(%arg0: i32, %arg1: i32) -> (i32, i32) {
    %c0_i32 = arith.constant 0 : i32
    %c0_i32_0 = arith.constant 0 : i32
    %c0_i32_1 = arith.constant 0 : i32
    return %c0_i32, %c0_i32_0 : i32, i32
  }
  func.func @transform_13(%arg0: i32, %arg1: i32) -> (i32, i32) {
    %c0_i32 = arith.constant 0 : i32
    %c0_i32_0 = arith.constant 0 : i32
    %c0_i32_1 = arith.constant 0 : i32
    return %c0_i32, %c0_i32_0 : i32, i32
  }
  func.func @transform_14(%arg0: i32, %arg1: i32) -> (i32, i32) {
    %c0_i32 = arith.constant 0 : i32
    %c0_i32_0 = arith.constant 0 : i32
    %c0_i32_1 = arith.constant 0 : i32
    return %c0_i32, %c0_i32_0 : i32, i32
  }
  func.func @transform_15(%arg0: i32, %arg1: i32) -> (i32, i32) {
    %c0_i32 = arith.constant 0 : i32
    %c0_i32_0 = arith.constant 0 : i32
    %c0_i32_1 = arith.constant 0 : i32
    return %c0_i32, %c0_i32_0 : i32, i32
  }
  func.func @transform_16(%arg0: i32, %arg1: i32) -> (i32, i32, i32) {
    %c0_i32 = arith.constant 0 : i32
    %c0_i32_0 = arith.constant 0 : i32
    return %arg0, %arg1, %c0_i32 : i32, i32, i32
  }
}

</mosaic_0001>

<bundles_post_ra>
// kernel: tpu_custom_call.1
= control target key start
LH: loop header
LB: loop body
LE: loop exit
PB: predicated region body
PF: predicated region fallthrough
CT: control target
= control target key end

     0   :  { %s2783_s0 = inlined_call_operand.vmem [shape: f32[2,8,32], index: 0, kind: input, shape index: {}]   ;;  %s2784_s1 = inlined_call_operand.vmem [shape: f32[2,8,32], index: 1, kind: input, shape index: {}]   ;;  %s2785_s2 = inlined_call_operand.vmem [shape: bf16[32,32], index: 2, kind: input, shape index: {}]   ;;  %s2786_s3 = inlined_call_operand.hbm [shape: f32[1,32], index: 3, kind: input, shape index: {}]   ;;  %s2787_s4 = inlined_call_operand.hbm [shape: bf16[32,64], index: 4, kind: input, shape index: {}]   ;;  %s2788_s5 = inlined_call_operand.hbm [shape: f32[1,64], index: 5, kind: input, shape index: {}]   ;;  %s2789_s6 = inlined_call_operand.hbm [shape: bf16[32,32], index: 6, kind: input, shape index: {}]   ;;  %s2790_s7 = inlined_call_operand.hbm [shape: f32[1,32], index: 7, kind: input, shape index: {}]   ;;  %s2791_s8 = inlined_call_operand.hbm [shape: f32[1,32], index: 8, kind: input, shape index: {}]   ;;  %s2792_s9 = inlined_call_operand.hbm [shape: f32[1,32], index: 9, kind: input, shape index: {}]   ;;  %s2793_s10 = inlined_call_operand.vmem [shape: bf16[32,64], index: 10, kind: input, shape index: {}]   ;;  %s2794_s11 = inlined_call_operand.vmem [shape: f32[1,64], index: 11, kind: input, shape index: {}]   ;;  %s2795_s12 = inlined_call_operand.vmem [shape: bf16[64,32], index: 12, kind: input, shape index: {}]   ;;  %s2796_s13 = inlined_call_operand.vmem [shape: f32[1,32], index: 13, kind: input, shape index: {}]   ;;  %s2797_s14 = inlined_call_operand.vmem [shape: f32[1,32], index: 14, kind: input, shape index: {}]   ;;  %s2798_s15 = inlined_call_operand.vmem [shape: f32[1,32], index: 15, kind: input, shape index: {}]   ;;  %s2799_s16 = inlined_call_operand.hbm [shape: f32[2,8,32], index: 16, kind: output, shape index: {}]  }
   0x1   :  { %2812 = sst [smem:[#allocation28_spill]] %s2783_s0 }
   0x2   :  { %2813 = sst [smem:[#allocation29_spill]] %s2784_s1 }
   0x3   :  { %2814 = sst [smem:[#allocation30_spill]] %s2798_s15 }
   0x4   :  { %2815 = sst [smem:[#allocation31_spill]] %s2799_s16 }
   0x5   :  { %21 = vsyncpa [#allocation4], 0 }
   0x6   :  { %22 = vsyncpa [#allocation7], 0 }
   0x7   :  { %23 = vsyncpa [#allocation10], 0 }
   0x8   :  { %24 = vsyncpa [#allocation13], 0 }
   0x9   :  { %25 = vsyncpa [#allocation5], 0 }
   0xa   :  { %27 = vsyncpa [#allocation5 + $0x1], 0  ;;  %s2461_s21 = smov 0   ;;  %s2463_s22 = smov 0  }
   0xb   :  { %s2465_s23 = smov 0   ;;  %s2467_s24 = smov 0  }
   0xc   :  { %s2469_s25 = smov 0   ;;  %s2471_s26 = smov 0  }
   0xd LB: > { %2816 = sst [smem:[#allocation21_spill]] %s2332_s21  ;;  %s1717_s27 = sadd.s32 4294967295, %s2352_s26   ;;  %s2352_s26 = sphi %s2471_s26, %s33_s26   ;;  %s2348_s25 = sphi %s2469_s25, %s2843_s25   ;;  %s2344_s24 = sphi %s2467_s24, %s2846_s24   ;;  %s2340_s23 = sphi %s2465_s23, %s2841_s23   ;;  %s2336_s22 = sphi %s2463_s22, %s2845_s22   ;;  %s2332_s21 = sphi %s2461_s21, %s2844_s21  }
   0xe   : > { %2817 = sst [smem:[#allocation22_spill]] %s2340_s23  ;;  %s1718_s28 = sadd.s32 4294967294, %s2352_s26  }
   0xf   : > { %2818 = sst [smem:[#allocation23_spill]] %s2348_s25  ;;  %s45_s29 = sadd.s32 1, %s2348_s25 }
  0x10   : > { %2819 = sst [smem:[#allocation24_spill]] %s2352_s26  ;;  %s402_s30 = sadd.s32 1, %s2340_s23 }
  0x11   : > { %p47_p0 = scmp.ge.s32.totalorder %s45_s29, 2  ;;  %p412_p1 = scmp.ne.s32.totalorder %s2340_s23, %s2336_s22 }
  0x12   : > { %p413_p2 = scmp.eq.s32.totalorder %s1717_s27, 1  ;;  %p418_p3 = scmp.ne.s32.totalorder %s2336_s22, %s2332_s21 }
  0x13   : > { %s2848_s29 = smov (%p47_p0, %s45_s29), 0  ;;  %p419_p5 = scmp.eq.s32.totalorder %s1718_s28, 1 }
  0x14   : > { %2820 = sst [smem:[#allocation25_spill]] %s2848_s29  ;;  %p2501_p4 = por %p413_p2, %p412_p1 }
  0x15   : > { %s397_s17 = ssub.s32 %s2348_s25, %s2848_s29  ;;  %p1719_p6 = scmp.ge.s32.totalorder %s2352_s26, 1 }
  0x16   : > { %s2821_s0 = scalar_select %p2501_p4, 1, 0 }
  0x17   : > { %p400_p7 = scmp.eq.s32.totalorder %s397_s17, 0  ;;  %p2508_p8 = por %p419_p5, %p418_p3 }
  0x18   : > { %p426_p9 = scmp.lt.s32.totalorder %s2352_s26, 3  ;;  %p2520_p11 = scmp.eq.s32.totalorder %s1717_s27, 0 }
  0x19   : > { %s2822_s18 = scalar_select %p2508_p8, 1, 0 }
  0x1a   : > { %s2514_s19 = scalar_select %p400_p7, %s2340_s23, %s402_s30  }
  0x1b   : > { %2823 = sst [smem:[#allocation26_spill]] %s2822_s18  ;;  %p2516_p10 = pnand %p1719_p6, %p426_p9 }
  0x1c   : > { %2824 = sst [smem:[#allocation27_spill]] %s2514_s19  ;;  %s2354_s28 = smov [#allocation6]  }
  0x1d   : > { %s2825_s20 = scalar_select %p2516_p10, 1, 0 }
  0x1e   : > { %s2826_s21 = scalar_select %p2520_p11, 1, 0 }
  0x1f   : > { %p1932_p12 = pneg %p2516_p10  ;;  %s452_s17 = sshll.u32 %s2354_s28, 4  ;;  %s453_s17 = int_to_ptr.vmem [resolvable:$true] %s452_s17 }
  0x20   : > { %s2355_s30 = smov [#allocation9]   ;;  %s2089_s19 = scalar_lea.vmem %s453_s17, 256 }
  0x21   : > { %p2528_p13 = pnand %p2520_p11, %p1932_p12  ;;  %s476_s25 = sshll.u32 %s2355_s30, 4  ;;  %s477_s25 = int_to_ptr.vmem [resolvable:$true] %s476_s25 }
  0x22   : > { %p2090_p1 = scmp.ne.s32.totalorder %s453_s17, %s2089_s19  ;;  %p2097_p5 = scmp.lt.s32.totalorder %s453_s17, %s453_s17 }
  0x23   : > { %p2534_p0 = pneg %p2528_p13  ;;  %p2098_p6 = scmp.lt.s32.totalorder %s2089_s19, %s2089_s19 }
  0x25   : > { %p2092_p2 = pnand %p2090_p1, %p2534_p0  ;;  %p2099_p7 = por %p2098_p6, %p2097_p5 }
  0x27   : > { %p2093_p3 = pneg %p2092_p2 }
  0x29   : > { %p2100_p9 = pnand %p2099_p7, %p2093_p3 }
  0x2b   : > { %2103 = shalt.err (!%p2100_p9)
}
  0x2c   : > { %s2356_s28 = smov 64   ;;  %s2357_s30 = smov 4  }
  0x2d   : > { %1938 = dma.hbm_to_vmem [thread:$0]  (!%p2528_p13), %s2787_s4, 256, %s453_s17, [#allocation7], %s2356_s28, %s2356_s28, %s2357_s30  }
  0x2e   : > { %s2115_s26 = scalar_lea.vmem %s477_s25, 256  ;;  %p2123_p2 = scmp.lt.s32.totalorder %s477_s25, %s477_s25 }
  0x2f   : > { %p2116_p12 = scmp.ne.s32.totalorder %s477_s25, %s2115_s26  ;;  %p2124_p4 = scmp.lt.s32.totalorder %s2115_s26, %s2115_s26 }
  0x31   : > { %p2118_p8 = pnand %p2116_p12, %p2534_p0  ;;  %p2125_p11 = por %p2124_p4, %p2123_p2 }
  0x33   : > { %p2119_p1 = pneg %p2118_p8 }
  0x35   : > { %p2126_p5 = pnand %p2125_p11, %p2119_p1 }
  0x37   : > { %2129 = shalt.err (!%p2126_p5)
}
  0x38   : > { %1944 = dma.hbm_to_vmem [thread:$0]  (!%p2528_p13), %s2789_s6, 256, %s477_s25, [#allocation10], %s2356_s28, %s2356_s28, %s2357_s30  }
  0x39   : > { %s2358_s15 = smov [#allocation12]  }
  0x3a   : > { %s501_s23 = sshll.u32 %s2358_s15, 4  ;;  %s502_s23 = int_to_ptr.vmem [resolvable:$true] %s501_s23 }
  0x3b   : > { %s2141_s18 = scalar_lea.vmem %s502_s23, 16  ;;  %s2148_s17 = scalar_lea.vmem %s502_s23, 32 }
  0x3c   : > { %p2142_p3 = scmp.ne.s32.totalorder %s502_s23, %s2141_s18  ;;  %p2149_p7 = scmp.lt.s32.totalorder %s502_s23, %s502_s23 }
  0x3d   : > { %p2150_p4 = scmp.lt.s32.totalorder %s2148_s17, %s2141_s18 }
  0x3e   : > { %p2144_p6 = pnand %p2142_p3, %p2534_p0 }
  0x3f   : > { %p2151_p11 = por %p2150_p4, %p2149_p7 }
  0x40   : > { %p2145_p8 = pneg %p2144_p6 }
  0x42   : > { %p2152_p9 = pnand %p2151_p11, %p2145_p8 }
  0x44   : > { %2155 = shalt.err (!%p2152_p9)
}
  0x45   : > { %1950 = dma.hbm_to_vmem [thread:$0]  (!%p2528_p13), %s2791_s8, 16, %s502_s23, [#allocation13]  }
  0x46   : > { %s2359_s15 = smov [#allocation3]   ;;  %s2360_s28 = smov [#allocation8]  }
  0x47   : > { %s442_s25 = sshll.u32 %s2359_s15, 4  ;;  %s466_s30 = sshll.u32 %s2360_s28, 4  ;;  %s443_s25 = int_to_ptr.vmem [resolvable:$true] %s442_s25  ;;  %s467_s30 = int_to_ptr.vmem [resolvable:$true] %s466_s30 }
  0x48   : > { %s2167_s19 = scalar_lea.vmem %s443_s25, 16  ;;  %s2174_s18 = scalar_lea.vmem %s443_s25, 32 }
  0x49   : > { %p2168_p12 = scmp.ne.s32.totalorder %s443_s25, %s2167_s19  ;;  %p2175_p5 = scmp.lt.s32.totalorder %s443_s25, %s443_s25 }
  0x4a   : > { %p2176_p3 = scmp.lt.s32.totalorder %s2174_s18, %s2167_s19 }
  0x4b   : > { %p2170_p1 = pnand %p2168_p12, %p2534_p0 }
  0x4c   : > { %p2177_p6 = por %p2176_p3, %p2175_p5 }
  0x4d   : > { %p2171_p2 = pneg %p2170_p1 }
  0x4f   : > { %p2178_p8 = pnand %p2177_p6, %p2171_p2 }
  0x51   : > { %2181 = shalt.err (!%p2178_p8)
}
  0x52   : > { %1935 = dma.hbm_to_vmem [thread:$0]  (!%p2528_p13), %s2786_s3, 16, %s443_s25, [#allocation4]  }
  0x53   : > { %s2193_s26 = scalar_lea.vmem %s467_s30, 16  ;;  %s2200_s16 = scalar_lea.vmem %s467_s30, 32 }
  0x54   : > { %p2194_p7 = scmp.ne.s32.totalorder %s467_s30, %s2193_s26  ;;  %p2201_p9 = scmp.lt.s32.totalorder %s467_s30, %s467_s30 }
  0x55   : > { %p2202_p12 = scmp.lt.s32.totalorder %s2200_s16, %s2193_s26 }
  0x56   : > { %p2196_p4 = pnand %p2194_p7, %p2534_p0 }
  0x57   : > { %p2203_p1 = por %p2202_p12, %p2201_p9 }
  0x58   : > { %p2197_p11 = pneg %p2196_p4 }
  0x5a   : > { %p2204_p10 = pnand %p2203_p1, %p2197_p11 }
  0x5c   : > { %2207 = shalt.err (!%p2204_p10)
}
  0x5d   : > { %1941 = dma.hbm_to_vmem [thread:$0]  (!%p2528_p13), %s2788_s5, 16, %s467_s30, [#allocation7]  }
  0x5e   : > { %s2361_s19 = smov [#allocation11]   ;;  %s2362_s18 = smov [#allocation14]  }
  0x5f   : > { %s490_s25 = sshll.u32 %s2361_s19, 4  ;;  %s512_s23 = sshll.u32 %s2362_s18, 4  ;;  %s491_s25 = int_to_ptr.vmem [resolvable:$true] %s490_s25  ;;  %s513_s23 = int_to_ptr.vmem [resolvable:$true] %s512_s23 }
  0x60   : > { %s2219_s17 = scalar_lea.vmem %s491_s25, 16  ;;  %s2226_s26 = scalar_lea.vmem %s491_s25, 32 }
  0x61   : > { %p2220_p2 = scmp.ne.s32.totalorder %s491_s25, %s2219_s17  ;;  %p2227_p10 = scmp.lt.s32.totalorder %s491_s25, %s491_s25 }
  0x62   : > { %p2228_p6 = scmp.lt.s32.totalorder %s2226_s26, %s2219_s17 }
  0x63   : > { %p2222_p5 = pnand %p2220_p2, %p2534_p0 }
  0x64   : > { %p2229_p8 = por %p2228_p6, %p2227_p10 }
  0x65   : > { %p2223_p3 = pneg %p2222_p5 }
  0x67   : > { %p2230_p7 = pnand %p2229_p8, %p2223_p3 }
  0x69   : > { %2233 = shalt.err (!%p2230_p7)
}
  0x6a   : > { %1947 = dma.hbm_to_vmem [thread:$0]  (!%p2528_p13), %s2790_s7, 16, %s491_s25, [#allocation10]  }
  0x6b   : > { %s2245_s15 = scalar_lea.vmem %s513_s23, 16  ;;  %s2252_s28 = scalar_lea.vmem %s513_s23, 32 }
  0x6c   : > { %p2246_p4 = scmp.ne.s32.totalorder %s513_s23, %s2245_s15  ;;  %p2253_p12 = scmp.lt.s32.totalorder %s513_s23, %s513_s23 }
  0x6d   : > { %p2254_p1 = scmp.lt.s32.totalorder %s2252_s28, %s2245_s15 }
  0x6e   : > { %p2248_p11 = pnand %p2246_p4, %p2534_p0 }
  0x6f   : > { %p2255_p2 = por %p2254_p1, %p2253_p12 }
  0x70   : > { %p2249_p9 = pneg %p2248_p11 }
  0x72   : > { %p2256_p5 = pnand %p2255_p2, %p2249_p9 }
  0x74   : > { %2259 = shalt.err (!%p2256_p5)
}
  0x75   : > { %1953 = dma.hbm_to_vmem [thread:$0]  (!%p2528_p13), %s2792_s9, 16, %s513_s23, [#allocation13]  }
  0x76   : > { %p2829_p3 = scmp.ne.s32.totalorder %s2825_s20, 0 }
  0x77   : > { %p2830_p10 = scmp.ne.s32.totalorder (!%p2829_p3), %s2826_s21, 0 }
  0x78   : > { %560 = sbr.rel (%p2829_p3) target bundleno = 2579 (0xa13), region = 84 }
  0x7d   : > { %2311 = dma.done.wait (%p2830_p10), [#allocation4], 16  }
  0x7e   : > { %2313 = vsyncadd (%p2830_p10), [#allocation4], 4294967280 }
  0x7f   : > { %2315 = dma.done.wait (%p2830_p10), [#allocation7], 272  }
  0x80   : > { %2317 = vsyncadd (%p2830_p10), [#allocation7], 4294967024 }
  0x81   : > { %2319 = dma.done.wait (%p2830_p10), [#allocation10], 272  }
  0x82   : > { %2321 = vsyncadd (%p2830_p10), [#allocation10], 4294967024 }
  0x83   : > { %2323 = dma.done.wait (%p2830_p10), [#allocation13], 32  }
  0x84   : > { %2325 = vsyncadd (%p2830_p10), [#allocation13], 4294967264  ;;  %p640_p13 = scmp.lt.s32.totalorder %s2344_s24, 1  ;;  %v2363_v0 = vmov 0.0   ;;  %vm2364_vm0 = vmmov 0   ;;  %s2831_s25 = sld [smem:[#allocation28_spill]] }
  0x85   : > { %1810 = vmatprep.subr.bf16.mxu1 %v2363_v0  ;;  %1814 = vmatprep.mubr.msk.bf16.mxu1 %vm2364_vm0, %v2363_v0  ;;  %v2042_v1 = vld [vmem:[%s2785_s2 + $0x8] sm:$0xff]   ;;  %v2043_v2 = vld [vmem:[%s2785_s2] sm:$0xff]   ;;  %vm679_vm1 = vcmask 261120   ;;  %v2044_v4 = vld [vmem:[#allocation6 + $0x8] sm:$0xff]   ;;  %s2832_s1 = sld [smem:[#allocation29_spill]]  ;;  %vm791_vm2 = vcmask 64512  }
  0x86   : > { %s641_s29 = scalar_select %p640_p13, %s2344_s24, 1  ;;  %1826 = vmatprep.subr.bf16.mxu0 %v2363_v0  ;;  %1828 = vmatprep.mubr.msk.bf16.mxu0 %vm2364_vm0, %v2363_v0  ;;  %v2045_v6 = vld [vmem:[#allocation6] sm:$0xff]   ;;  %v1743_v13 = vld [vmem:[#allocation8] ss:$0 sm:$0xff]  ;;  %v1739_v14 = vld [vmem:[#allocation3] ss:$0 sm:$0xff] }
  0x87   : > { %1811 = vmatpush3.bf16.msra.mxu1 %v2042_v1  ;;  %s2365_s18 = smov 112   ;;  %s2368_s27 = smov 96   ;;  %vm857_vm3 = vcmask 1043456   ;;  %vm1018_vm4 = vcmask 130112   ;;  %vm1135_vm5 = vcmask 195712   ;;  %vm1252_vm6 = vcmask 261312  }
  0x88   : > { %s1737_s20 = sshll.u32 %s641_s29, 3  ;;  %1812 = vmatprep.subr.bf16.mxu1 %v2363_v0  ;;  %s2366_s29 = smov 120   ;;  %vm1468_vm9 = vcmask 523264  }
  0x89   : > { %s2369_s21 = smov 80   ;;  %s2372_s17 = smov 8  }
  0x8a   : > { %s646_s23 = scalar_lea.vmem %s2831_s25, %s1737_s20  ;;  %s2370_s25 = smov 72  }
  0x8b   : > { %v2622_v3 = vld [vmem:[%s646_s23] sm:$0xff]  ;;  %1813 = vmatpush3.bf16.msra.mxu1 %v2043_v2  ;;  %s650_s19 = scalar_lea.vmem %s2832_s1, %s1737_s20  ;;  %s2367_s20 = smov 104  }
  0x8c   : > { %v653_v5 = vpack.c.bf16 %v2622_v3, %v2622_v3  ;;  %1818 = vmatprep.subr.bf16.mxu1 %v2363_v0  ;;  %v654_v7 = vld [vmem:[%s650_s19] sm:$0xff]  ;;  %s2371_s23 = smov 88   ;;  %s2373_s26 = smov 16  }
  0x8d   : > { %v655_v8 = vpack.c.bf16 %v654_v7, %v654_v7  ;;  %s2374_s30 = smov 24   ;;  %s637_s28 = sand.u32 1, %s2336_s22  }
  0x8e   : > { %1815 = vmatmul.mubr.msk.bf16.vlgmr.msra.gmra.mxu1 %vm679_vm1, %v653_v5  ;;  %s1736_s19 = sshll.u32 %s637_s28, 3  ;;  %s2834_s16 = sld [smem:[#allocation31_spill]] }
  0x8f   : > { %1819 = vmatpush3.bf16.msra.mxu1 %v2044_v4  ;;  %1822 = vmatprep.mubr.msk.bf16.mxu1 %vm2364_vm0, %v2363_v0  ;;  %s1551_s1 = scalar_lea.sflag [#allocation5], %s637_s28  ;;  %p2835_p6 = scmp.ne.s32.totalorder %s2821_s0, 0 }
  0x90   : > { %1820 = vmatprep.subr.bf16.mxu1 %v2363_v0 }
  0x93   : > { %1821 = vmatpush3.bf16.msra.mxu1 %v2045_v6 }
  0x94   : > { %1832 = vmatprep.subr.bf16.mxu1 %v2363_v0 }
  0x96   : > { %1823 = vmatmul.mubr.msk.bf16.vlgmr.msra.gmra.mxu1 %vm679_vm1, %v655_v8 }
  0x97   : > { %1834 = vmatprep.mubr.msk.bf16.mxu1 %vm2364_vm0, %v2363_v0 }
 0x14e   : > { %v717_v9 = vpop.f32.mrf.mxu1 }
 0x14f   : > { %v718_v18 = vadd.f32 %v1739_v14, %v717_v9 }
 0x150   : > { %v1816_v10 = vpop.f32.mrf.mxu1 }
 0x151   : > { %v789_v23 = vpack.c.bf16 %v718_v18, %v718_v18 }
 0x152   : > { %v720_v11 = vpop.f32.mrf.mxu1 }
 0x154   : > { %v1817_v12 = vpop.f32.mrf.mxu1 }
 0x156   : > { %v783_v15 = vpop.f32.mrf.mxu1 }
 0x157   : > { %v784_v16 = vadd.f32 %v1743_v13, %v783_v15 }
 0x158   : > { %v1824_v17 = vpop.f32.mrf.mxu1 }
 0x159   : > { %v2639_v19 = vpack.c.bf16 %v784_v16, %v784_v16 }
 0x15a   : > { %v786_v20 = vpop.f32.mrf.mxu1 }
 0x15b   : > { %1022 = vrot.lane.b32.xlu1 %v2639_v19, %s2365_s18  ;;  %905 = vrot.lane.b32.xlu0 %v2639_v19, %s2366_s29  ;;  %v796_v21 = vsel %vm791_vm2, %v2639_v19, 0 }
 0x15c   : > { %v1825_v22 = vpop.f32.mrf.mxu1  ;;  %1827 = vmatpush3.bf16.xpose.msra.mxu0 %v796_v21 }
 0x15d   : > { %1838 = vmatprep.subr.bf16.mxu0 %v2363_v0 }
 0x15f   : > { %1020 = vrot.lane.b32.xlu1 %v789_v23, %s2365_s18  ;;  %903 = vrot.lane.b32.xlu0 %v789_v23, %s2366_s29  ;;  %s2375_s29 = smov [#allocation15]  }
 0x163   : > { %1137 = vrot.lane.b32.xlu1 %v789_v23, %s2367_s20  ;;  %1139 = vrot.lane.b32.xlu0 %v2639_v19, %s2367_s20  ;;  %s2264_s20 = sshll.u32 %s2375_s29, 4  ;;  %s2265_s20 = int_to_ptr.vmem [resolvable:$false] %s2264_s20 }
 0x164   : > { %1829 = vmatmul.mubr.msk.bf16.vlgmr.msra.gmra.mxu0 %vm791_vm2, %v789_v23 }
 0x165   : > { %1840 = vmatprep.mubr.msk.bf16.mxu0 %vm2364_vm0, %v2363_v0 }
 0x1cd   : > { %v906_v24 = vpop.permute.xlu0 %905  ;;  %v1023_v26 = vpop.permute.xlu1 %1022 }
 0x1ce   : > { %v911_v25 = vsel %vm791_vm2, %v906_v24, 0  ;;  %v1028_v28 = vsel %vm791_vm2, %v1023_v26, 0 }
 0x1cf   : > { %1839 = vmatpush3.bf16.xpose.msra.mxu0 %v911_v25 }
 0x1d0   : > { %1850 = vmatprep.subr.bf16.mxu0 %v2363_v0 }
 0x1d1   : > { %v904_v27 = vpop.permute.xlu0 %903  ;;  %v1021_v30 = vpop.permute.xlu1 %1020 }
 0x1d5   : > { %v1140_v29 = vpop.permute.xlu0 %1139  ;;  %v1138_v32 = vpop.permute.xlu1 %1137 }
 0x1d6   : > { %1841 = vmatmul.mubr.msk.bf16.vlgmr.msra.gmra.mxu0 %vm791_vm2, %v904_v27  ;;  %v1145_v31 = vsel %vm791_vm2, %v1140_v29, 0 }
 0x1d7   : > { %1851 = vmatpush3.bf16.xpose.msra.mxu0 %v1028_v28  ;;  %1852 = vmatprep.mubr.msk.bf16.mxu0 %vm2364_vm0, %v2363_v0 }
 0x1d8   : > { %1862 = vmatprep.subr.bf16.mxu0 %v2363_v0 }
 0x1de   : > { %1853 = vmatmul.mubr.msk.bf16.vlgmr.msra.gmra.mxu0 %vm791_vm2, %v1021_v30 }
 0x1df   : > { %1863 = vmatpush3.bf16.xpose.msra.mxu0 %v1145_v31  ;;  %1864 = vmatprep.mubr.msk.bf16.mxu0 %vm2364_vm0, %v2363_v0 }
 0x1e0   : > { %1874 = vmatprep.subr.bf16.mxu0 %v2363_v0 }
 0x1e6   : > { %1865 = vmatmul.mubr.msk.bf16.vlgmr.msra.gmra.mxu0 %vm791_vm2, %v1138_v32 }
 0x1e7   : > { %1878 = vmatprep.mubr.msk.bf16.mxu0 %vm2364_vm0, %v2363_v0 }
 0x224   : > { %v832_v33 = vpop.f32.mrf.mxu0 }
 0x225   : > { %v838_v34 = vmul.f32 0.35355338, %v832_v33 }
 0x226   : > { %v1830_v35 = vpop.f32.mrf.mxu0 }
 0x227   : > { %v839_v36 = vsel %vm791_vm2, %v838_v34, -inf }
 0x228   : > { %840 = vmax.xlane.f32.xlu0 %v839_v36  ;;  %v835_v37 = vpop.f32.mrf.mxu0 }
 0x22a   : > { %v1831_v38 = vpop.f32.mrf.mxu0 }
 0x296   : > { %v947_v39 = vpop.f32.mrf.mxu0 }
 0x297   : > { %v953_v40 = vmul.f32 0.35355338, %v947_v39 }
 0x298   : > { %v1842_v41 = vpop.f32.mrf.mxu0 }
 0x299   : > { %v954_v42 = vsel %vm791_vm2, %v953_v40, -inf }
 0x29a   : > { %955 = vmax.xlane.f32.xlu1 %v954_v42  ;;  %v950_v43 = vpop.f32.mrf.mxu0 }
 0x29c   : > { %v1843_v44 = vpop.f32.mrf.mxu0 }
 0x29e   : > { %v1064_v45 = vpop.f32.mrf.mxu0 }
 0x29f   : > { %v1070_v46 = vmul.f32 0.35355338, %v1064_v45 }
 0x2a0   : > { %v1854_v47 = vpop.f32.mrf.mxu0 }
 0x2a1   : > { %v1071_v48 = vsel %vm791_vm2, %v1070_v46, -inf }
 0x2a2   : > { %1072 = vmax.xlane.f32.xlu0 %v1071_v48  ;;  %v1067_v49 = vpop.f32.mrf.mxu0  ;;  %v2047_v48 = vld [vmem:[#allocation9] sm:$0xff]  }
 0x2a4   : > { %v1855_v50 = vpop.f32.mrf.mxu0 }
 0x2a6   : > { %v1181_v51 = vpop.f32.mrf.mxu0 }
 0x2a7   : > { %v1187_v52 = vmul.f32 0.35355338, %v1181_v51 }
 0x2a8   : > { %v1866_v53 = vpop.f32.mrf.mxu0 }
 0x2a9   : > { %v1188_v54 = vsel %vm791_vm2, %v1187_v52, -inf }
 0x2aa   : > { %1189 = vmax.xlane.f32.xlu0 %v1188_v54  ;;  %v1184_v55 = vpop.f32.mrf.mxu0 }
 0x2ac   : > { %v1867_v56 = vpop.f32.mrf.mxu0 }
 0x2b1   : > { %v841_v57 = vpop.xlane.xlu0 %840 }
 0x2b2   : > { %v842_v58 = vsub.f32 %v838_v34, %v841_v57 }
 0x2b4   : > { %v843_v59 = vmul.f32 1.442695, %v842_v58 }
 0x2b6   : > { %2054 = vpow2.f32 %v843_v59 }
 0x2c3   : > { %v2055_v60 = vpop.eup %2054 }
 0x2c4   : > { %v845_v61 = vsel %vm791_vm2, %v2055_v60, 0.0 }
 0x2c5   : > { %846 = vadd.xlane.f32.xlu1 %v845_v61 }
 0x2d6   : > { %852 = vrot.lane.b32.xlu1 %v2639_v19, %s2368_s27 }
 0x323   : > { %v956_v62 = vpop.xlane.xlu1 %955 }
 0x324   : > { %v957_v63 = vsub.f32 %v953_v40, %v956_v62  ;;  %v1755_v62 = vld [vmem:[#allocation11] ss:$0 sm:$0xff] }
 0x326   : > { %v958_v1 = vmul.f32 1.442695, %v957_v63 }
 0x328   : > { %2056 = vpow2.f32 %v958_v1 }
 0x32b   : > { %v1073_v2 = vpop.xlane.xlu0 %1072 }
 0x32c   : > { %v1074_v4 = vsub.f32 %v1070_v46, %v1073_v2  ;;  %v2046_v46 = vld [vmem:[#allocation9 + $0x8] sm:$0xff]  }
 0x32d   : > { %1875 = vmatpush3.bf16.msra.mxu0 %v2046_v46 }
 0x32e   : > { %v1075_v5 = vmul.f32 1.442695, %v1074_v4  ;;  %1876 = vmatprep.subr.bf16.mxu0 %v2363_v0 }
 0x330   : > { %2058 = vpow2.f32 %v1075_v5 }
 0x331   : > { %1877 = vmatpush3.bf16.msra.mxu0 %v2047_v48 }
 0x332   : > { %1890 = vmatprep.subr.bf16.mxu0 %v2363_v0 }
 0x333   : > { %v1190_v6 = vpop.xlane.xlu0 %1189 }
 0x334   : > { %v1191_v7 = vsub.f32 %v1187_v52, %v1190_v6 }
 0x335   : > { %v2057_v8 = vpop.eup %2056 }
 0x336   : > { %v1192_v9 = vmul.f32 1.442695, %v1191_v7  ;;  %v960_v10 = vsel %vm791_vm2, %v2057_v8, 0.0 }
 0x337   : > { %961 = vadd.xlane.f32.xlu0 %v960_v10 }
 0x338   : > { %2060 = vpow2.f32 %v1192_v9 }
 0x33d   : > { %v2059_v11 = vpop.eup %2058 }
 0x33e   : > { %v1077_v12 = vsel %vm791_vm2, %v2059_v11, 0.0 }
 0x33f   : > { %1078 = vadd.xlane.f32.xlu1 %v1077_v12 }
 0x345   : > { %v2061_v13 = vpop.eup %2060 }
 0x346   : > { %v1194_v14 = vsel %vm791_vm2, %v2061_v13, 0.0 }
 0x347   : > { %1195 = vadd.xlane.f32.xlu0 %v1194_v14  ;;  %v2050_v14 = vld [vmem:[%s2795_s12 + $0x18] sm:$0xff]  }
 0x34e   : > { %v847_v15 = vpop.xlane.xlu1 %846 }
 0x34f   : > { %2062 = vrcp.f32 %v847_v15  ;;  %v2051_v15 = vld [vmem:[%s2795_s12 + $0x10] sm:$0xff]  }
 0x350   : > { %1083 = vrot.lane.b32.xlu1 %v2639_v19, %s2369_s21  ;;  %s2833_s21 = sld [smem:[#allocation30_spill]] }
 0x352   : > { %v853_v16 = vpop.permute.xlu1 %852 }
 0x353   : > { %v859_v17 = vsel %vm857_vm3, %v853_v16, 0 }
 0x354   : > { %1833 = vmatpush3.bf16.msra.mxu1 %v859_v17  ;;  %1200 = vrot.lane.b32.xlu1 %v2639_v19, %s2370_s25  ;;  %s1774_s25 = sshll.u32 %s2344_s24, 7  ;;  %s2266_s24 = scalar_lea.vmem %s2265_s20, 256 }
 0x355   : > { %1844 = vmatprep.subr.bf16.mxu1 %v2363_v0  ;;  %s1563_s15 = scalar_lea.hbm %s2834_s16, %s1774_s25 }
 0x35c   : > { %v2063_v18 = vpop.eup %2062 }
 0x35d   : > { %966 = vrot.lane.b32.xlu0 %v2639_v19, %s2371_s23  ;;  %v849_v20 = vmul.f32 %v2063_v18, %v2055_v60  ;;  %s639_s23 = scalar_lea.vmem [#allocation15], %s1736_s19 }
 0x35f   : > { %v850_v21 = vpack.c.bf16 %v849_v20, %v849_v20 }
 0x361   : > { %1835 = vmatmul.mubr.msk.bf16.vlgmr.msra.gmra.mxu1 %vm791_vm2, %v850_v21 }
 0x362   : > { %1846 = vmatprep.mubr.msk.bf16.mxu1 %vm2364_vm0, %v2363_v0 }
 0x3c0   : > { %v962_v22 = vpop.xlane.xlu0 %961 }
 0x3c1   : > { %2064 = vrcp.f32 %v962_v22 }
 0x3c8   : > { %v1079_v23 = vpop.xlane.xlu1 %1078 }
 0x3c9   : > { %2066 = vrcp.f32 %v1079_v23 }
 0x3cc   : > { %v1084_v29 = vpop.permute.xlu1 %1083 }
 0x3cd   : > { %v1089_v31 = vsel %vm857_vm3, %v1084_v29, 0 }
 0x3ce   : > { %v2065_v24 = vpop.eup %2064 }
 0x3cf   : > { %v964_v26 = vmul.f32 %v2065_v24, %v2057_v8 }
 0x3d0   : > { %v1196_v25 = vpop.xlane.xlu0 %1195  ;;  %v1201_v33 = vpop.permute.xlu1 %1200 }
 0x3d1   : > { %2068 = vrcp.f32 %v1196_v25  ;;  %v965_v19 = vpack.c.bf16 %v964_v26, %v964_v26  ;;  %v1206_v36 = vsel %vm857_vm3, %v1201_v33, 0  ;;  %v1759_v26 = vld [vmem:[#allocation12] ss:$0 sm:$0xff]  ;;  %v1761_v33 = vld [vmem:[%s2794_s11] ss:$0 sm:$0xff] }
 0x3d4   : > { %v967_v27 = vpop.permute.xlu0 %966 }
 0x3d5   : > { %v972_v28 = vsel %vm857_vm3, %v967_v27, 0 }
 0x3d6   : > { %1845 = vmatpush3.bf16.msra.mxu1 %v972_v28  ;;  %v2067_v30 = vpop.eup %2066  ;;  %v1760_v28 = vld [vmem:[#allocation14] ss:$0 sm:$0xff] }
 0x3d7   : > { %1856 = vmatprep.subr.bf16.mxu1 %v2363_v0  ;;  %v1081_v32 = vmul.f32 %v2067_v30, %v2059_v11 }
 0x3d9   : > { %1847 = vmatmul.mubr.msk.bf16.vlgmr.msra.gmra.mxu1 %vm791_vm2, %v965_v19  ;;  %v1082_v34 = vpack.c.bf16 %v1081_v32, %v1081_v32  ;;  %v2053_v32 = vld [vmem:[%s2795_s12] sm:$0xff]  }
 0x3da   : > { %1857 = vmatpush3.bf16.msra.mxu1 %v1089_v31  ;;  %1858 = vmatprep.mubr.msk.bf16.mxu1 %vm2364_vm0, %v2363_v0  ;;  %v2052_v31 = vld [vmem:[%s2795_s12 + $0x8] sm:$0xff]  }
 0x3db   : > { %1868 = vmatprep.subr.bf16.mxu1 %v2363_v0 }
 0x3de   : > { %v2069_v35 = vpop.eup %2068 }
 0x3df   : > { %v1198_v37 = vmul.f32 %v2069_v35, %v2061_v13  ;;  %v2048_v13 = vld [vmem:[%s2793_s10 + $0x8] sm:$0xff]  }
 0x3e1   : > { %1859 = vmatmul.mubr.msk.bf16.vlgmr.msra.gmra.mxu1 %vm791_vm2, %v1082_v34  ;;  %v1199_v38 = vpack.c.bf16 %v1198_v37, %v1198_v37 }
 0x3e2   : > { %1869 = vmatpush3.bf16.msra.mxu1 %v1206_v36  ;;  %1870 = vmatprep.mubr.msk.bf16.mxu1 %vm2364_vm0, %v2363_v0 }
 0x3e3   : > { %1882 = vmatprep.subr.bf16.mxu1 %v2363_v0 }
 0x3e9   : > { %1871 = vmatmul.mubr.msk.bf16.vlgmr.msra.gmra.mxu1 %vm791_vm2, %v1199_v38 }
 0x3ea   : > { %1886 = vmatprep.mubr.msk.bf16.mxu1 %vm2364_vm0, %v2363_v0  ;;  %1883 = vmatpush3.bf16.msra.mxu1 %v2048_v13 }
 0x3eb   : > { %1884 = vmatprep.subr.bf16.mxu1 %v2363_v0 }
 0x421   : > { %v895_v39 = vpop.f32.mrf.mxu1 }
 0x422   : > { %901 = vst.msk [vmem:[#allocation2] sm:$0xff] %vm791_vm2, %v895_v39 }
 0x423   : > { %v1836_v40 = vpop.f32.mrf.mxu1 }
 0x425   : > { %v898_v41 = vpop.f32.mrf.mxu1 }
 0x427   : > { %v1837_v42 = vpop.f32.mrf.mxu1 }
 0x499   : > { %v1008_v43 = vpop.f32.mrf.mxu1 }
 0x49a   : > { %1015 = vrot.lane.b32.xlu0 %v1008_v43, %s2372_s17  ;;  %s1565_s17 = sshll.u32 %s639_s23, 4  ;;  %s1566_s17 = int_to_ptr.vmem [resolvable:$true] %s1565_s17 }
 0x49b   : > { %v1848_v44 = vpop.f32.mrf.mxu1  ;;  %s2260_s18 = scalar_lea.vmem %s1566_s17, 128  ;;  %p2267_p4 = scmp.lt.s32.totalorder %s1566_s17, %s2265_s20 }
 0x49c   : > { %p2261_p0 = scmp.ne.s32.totalorder %s1566_s17, %s2260_s18  ;;  %p2268_p11 = scmp.lt.s32.totalorder %s2266_s24, %s2260_s18 }
 0x49d   : > { %v1011_v45 = vpop.f32.mrf.mxu1 }
 0x49e   : > { %p2262_p8 = pnand %p2261_p0, %p2835_p6  ;;  %p2269_p9 = por %p2268_p11, %p2267_p4 }
 0x49f   : > { %v1849_v47 = vpop.f32.mrf.mxu1 }
 0x4a0   : > { %p2263_p7 = pneg %p2262_p8 }
 0x4a1   : > { %v1125_v49 = vpop.f32.mrf.mxu1 }
 0x4a2   : > { %1132 = vrot.lane.b32.xlu1 %v1125_v49, %s2373_s26  ;;  %p2270_p12 = pnand %p2269_p9, %p2263_p7 }
 0x4a3   : > { %v1860_v50 = vpop.f32.mrf.mxu1 }
 0x4a5   : > { %v1128_v51 = vpop.f32.mrf.mxu1 }
 0x4a7   : > { %v1861_v52 = vpop.f32.mrf.mxu1 }
 0x4a9   : > { %v1242_v53 = vpop.f32.mrf.mxu1 }
 0x4aa   : > { %1249 = vrot.lane.b32.xlu0 %v1242_v53, %s2374_s30 }
 0x4ab   : > { %v1872_v54 = vpop.f32.mrf.mxu1 }
 0x4ad   : > { %v1245_v55 = vpop.f32.mrf.mxu1 }
 0x4af   : > { %v1873_v56 = vpop.f32.mrf.mxu1 }
 0x50c   : > { %v1016_v57 = vpop.permute.xlu0 %1015 }
 0x50d   : > { %1019 = vst.msk [vmem:[#allocation2] sm:$0xff] %vm1018_vm4, %v1016_v57 }
 0x514   : > { %v1133_v58 = vpop.permute.xlu1 %1132 }
 0x515   : > { %1136 = vst.msk [vmem:[#allocation2] sm:$0xff] %vm1135_vm5, %v1133_v58 }
 0x51c   : > { %v1250_v59 = vpop.permute.xlu0 %1249 }
 0x51d   : > { %1253 = vst.msk [vmem:[#allocation2] sm:$0xff] %vm1252_vm6, %v1250_v59 }
 0x524   : > { %v1254_v60 = vld [vmem:[#allocation2] sm:$0xff] }
 0x525   : > { %v1255_v61 = vpack.c.bf16 %v1254_v60, %v1254_v60 }
 0x527   : > { %1879 = vmatmul.mubr.msk.bf16.vlgmr.msra.gmra.mxu0 %vm679_vm1, %v1255_v61 }
 0x528   : > { %1898 = vmatprep.mubr.msk.bf16.mxu0 %vm2364_vm0, %v2363_v0  ;;  %1891 = vmatpush3.bf16.msra.mxu0 %v2050_v14 }
 0x529   : > { %1892 = vmatprep.subr.bf16.mxu0 %v2363_v0 }
 0x52c   : > { %1893 = vmatpush3.bf16.msra.mxu0 %v2051_v15 }
 0x52d   : > { %1894 = vmatprep.subr.bf16.mxu0 %v2363_v0 }
 0x530   : > { %1895 = vmatpush3.bf16.msra.mxu0 %v2052_v31 }
 0x531   : > { %1896 = vmatprep.subr.bf16.mxu0 %v2363_v0  ;;  %v1765_v0 = vld [vmem:[%s2796_s13] ss:$0 sm:$0xff] }
 0x534   : > { %1897 = vmatpush3.bf16.msra.mxu0 %v2053_v32 }
 0x5e7   : > { %v1316_v63 = vpop.f32.mrf.mxu0 }
 0x5e8   : > { %v1317_v1 = vadd.f32 %v1755_v62, %v1316_v63  ;;  %v1771_v62 = vld [vmem:[%s2797_s14] ss:$0 sm:$0xff] }
 0x5e9   : > { %v1880_v2 = vpop.f32.mrf.mxu0 }
 0x5ea   : > { %v1322_v4 = vadd.f32 %v1317_v1, %v2622_v3  ;;  %v2049_v3 = vld [vmem:[%s2793_s10] sm:$0xff]  }
 0x5eb   : > { %v1319_v5 = vpop.f32.mrf.mxu0  ;;  %1885 = vmatpush3.bf16.msra.mxu1 %v2049_v3  ;;  %v1772_v1 = vld [vmem:[%s2833_s21] ss:$0 sm:$0xff] }
 0x5ec   : > { %v1325_v6 = vsel %vm679_vm1, %v1322_v4, 0.0 }
 0x5ed   : > { %1326 = vadd.xlane.f32.xlu1 %v1325_v6  ;;  %v1881_v7 = vpop.f32.mrf.mxu0 }
 0x676   : > { %v1327_v8 = vpop.xlane.xlu1 %1326 }
 0x677   : > { %v1329_v9 = vmul.f32 0.03125, %v1327_v8 }
 0x679   : > { %v1330_v10 = vsub.f32 %v1322_v4, %v1329_v9 }
 0x67b   : > { %v1331_v11 = vmul.f32 %v1330_v10, %v1330_v10 }
 0x67d   : > { %v1332_v12 = vsel %vm679_vm1, %v1331_v11, 0.0 }
 0x67e   : > { %1333 = vadd.xlane.f32.xlu0 %v1332_v12 }
 0x707   : > { %v1334_v16 = vpop.xlane.xlu0 %1333 }
 0x708   : > { %v1335_v17 = vmul.f32 0.032258064, %v1334_v16 }
 0x70a   : > { %2070 = vrsqrt.f32 %v1335_v17  ;;  %vm1338_vm7 = vcmp.eq.f32.partialorder %v1335_v17, inf  ;;  %v1341_v21 = vand.u32 2147483648, %v1335_v17  ;;  %vm1340_vm8 = vcmp.eq.f32.partialorder %v1335_v17, 0.0 }
 0x717   : > { %v2071_v18 = vpop.eup %2070 }
 0x718   : > { %v1337_v20 = vmul.f32 %v2071_v18, %v1335_v17 }
 0x71a   : > { %v1339_v22 = vsel %vm1338_vm7, %v1335_v17, %v1337_v20 }
 0x71b   : > { %v1342_v23 = vsel %vm1340_vm8, %v1341_v21, %v1339_v22 }
 0x71c   : > { %v1343_v24 = vadd.f32 1e-12, %v1342_v23 }
 0x71e   : > { %2072 = vrcp.f32 %v1343_v24 }
 0x72b   : > { %v2073_v25 = vpop.eup %2072 }
 0x72c   : > { %v1345_v27 = vmul.f32 %v2073_v25, %v1330_v10 }
 0x72e   : > { %v1352_v29 = vmul.f32 %v1759_v26, %v1345_v27 }
 0x730   : > { %v1359_v19 = vadd.f32 %v1760_v28, %v1352_v29 }
 0x732   : > { %v1360_v30 = vpack.c.bf16 %v1359_v19, %v1359_v19 }
 0x734   : > { %1887 = vmatmul.mubr.msk.bf16.vlgmr.msra.gmra.mxu1 %vm679_vm1, %v1360_v30 }
 0x7f4   : > { %v1421_v34 = vpop.f32.mrf.mxu1 }
 0x7f5   : > { %v1422_v35 = vadd.f32 %v1761_v33, %v1421_v34 }
 0x7f6   : > { %v1888_v36 = vpop.f32.mrf.mxu1 }
 0x7f7   : > { %v1427_v37 = vmax.f32 %v1422_v35, 0.0 }
 0x7f8   : > { %v1424_v38 = vpop.f32.mrf.mxu1 }
 0x7f9   : > { %v1428_v39 = vpack.c.bf16 %v1427_v37, %v1427_v37 }
 0x7fa   : > { %v1889_v40 = vpop.f32.mrf.mxu1 }
 0x7fb   : > { %1899 = vmatmul.mubr.msk.bf16.vlgmr.msra.gmra.mxu0 %vm1468_vm9, %v1428_v39 }
 0x8bb   : > { %v1506_v41 = vpop.f32.mrf.mxu0 }
 0x8bc   : > { %v1507_v42 = vadd.f32 %v1765_v0, %v1506_v41 }
 0x8bd   : > { %v1900_v43 = vpop.f32.mrf.mxu0 }
 0x8be   : > { %v1512_v44 = vadd.f32 %v1507_v42, %v1359_v19 }
 0x8bf   : > { %v1509_v45 = vpop.f32.mrf.mxu0 }
 0x8c0   : > { %v1515_v46 = vsel %vm679_vm1, %v1512_v44, 0.0 }
 0x8c1   : > { %1516 = vadd.xlane.f32.xlu0 %v1515_v46  ;;  %v1901_v47 = vpop.f32.mrf.mxu0 }
 0x94a   : > { %v1517_v48 = vpop.xlane.xlu0 %1516 }
 0x94b   : > { %v1518_v49 = vmul.f32 0.03125, %v1517_v48 }
 0x94d   : > { %v1519_v50 = vsub.f32 %v1512_v44, %v1518_v49 }
 0x94f   : > { %v1520_v51 = vmul.f32 %v1519_v50, %v1519_v50 }
 0x951   : > { %v1521_v52 = vsel %vm679_vm1, %v1520_v51, 0.0 }
 0x952   : > { %1522 = vadd.xlane.f32.xlu1 %v1521_v52 }
 0x9db   : > { %v1523_v53 = vpop.xlane.xlu1 %1522 }
 0x9dc   : > { %v1524_v54 = vmul.f32 0.032258064, %v1523_v53 }
 0x9de   : > { %2074 = vrsqrt.f32 %v1524_v54  ;;  %vm1527_vm10 = vcmp.eq.f32.partialorder %v1524_v54, inf  ;;  %v1530_v57 = vand.u32 2147483648, %v1524_v54  ;;  %vm1529_vm11 = vcmp.eq.f32.partialorder %v1524_v54, 0.0 }
 0x9eb   : > { %v2075_v55 = vpop.eup %2074 }
 0x9ec   : > { %v1526_v56 = vmul.f32 %v2075_v55, %v1524_v54 }
 0x9ee   : > { %v1528_v58 = vsel %vm1527_vm10, %v1524_v54, %v1526_v56 }
 0x9ef   : > { %v1531_v59 = vsel %vm1529_vm11, %v1530_v57, %v1528_v58 }
 0x9f0   : > { %v1532_v60 = vadd.f32 1e-12, %v1531_v59 }
 0x9f2   : > { %2076 = vrcp.f32 %v1532_v60 }
 0x9ff   : > { %v2077_v61 = vpop.eup %2076 }
 0xa00   : > { %v1534_v63 = vmul.f32 %v2077_v61, %v1519_v50 }
 0xa02   : > { %v1541_v2 = vmul.f32 %v1771_v62, %v1534_v63 }
 0xa04   : > { %v1548_v4 = vadd.f32 %v1772_v1, %v1541_v2 }
 0xa06   : > { %1549 = vst.msk [vmem:[%s639_s23] sm:$0xff] %vm679_vm1, %v1548_v4 }
 0xa07   : > { %2273 = shalt.err (!%p2270_p12)
}
 0xa08   : > { %s2274_s19 = scalar_lea.hbm %s1563_s15, 128  ;;  %s2278_s21 = scalar_lea.hbm %s2834_s16, 256 }
 0xa09   : > { %p2275_p1 = scmp.ne.s32.totalorder %s1563_s15, %s2274_s19  ;;  %p2279_p3 = scmp.lt.s32.totalorder %s1563_s15, %s2834_s16 }
 0xa0a   : > { %p2280_p10 = scmp.lt.s32.totalorder %s2278_s21, %s2274_s19 }
 0xa0b   : > { %p2276_p2 = pnand %p2275_p1, %p2835_p6 }
 0xa0c   : > { %p2281_p13 = por %p2280_p10, %p2279_p3 }
 0xa0d   : > { %p2277_p5 = pneg %p2276_p2 }
 0xa0f   : > { %p2282_p0 = pnand %p2281_p13, %p2277_p5 }
 0xa11   : > { %2285 = shalt.err (!%p2282_p0)
}
 0xa12   : > { %1930 = dma.vmem_to_hbm [thread:$0]  (%p2835_p6), %s1566_s17, 128, %s1563_s15, %s1551_s1  }
 0xa13 PF: > { %s2836_s26 = sld [smem:[#allocation24_spill]] }
 0xa14   : > { %s2837_s30 = sld [smem:[#allocation21_spill]] }
 0xa15   : > { %s2838_s18 = sld [smem:[#allocation26_spill]] }
 0xa19   : > { %p1972_p8 = scmp.ge.s32.totalorder %s2836_s26, 2 }
 0xa1a   : > { %s1577_s29 = sand.u32 1, %s2837_s30  }
 0xa1b   : > { %p2839_p7 = scmp.ne.s32.totalorder %s2838_s18, 0  ;;  %s1578_s20 = scalar_lea.sflag [#allocation5], %s1577_s29 }
 0xa1d   : > { %p1955_p4 = pnand %p1972_p8, %p2839_p7 }
 0xa1f   : > { %p1956_p11 = pneg %p1955_p4 }
 0xa21   : > { %2327 = dma.done.wait (%p1956_p11), %s1578_s20, 128  }
 0xa22   : > { %2329 = vsyncadd (%p1956_p11), %s1578_s20, 4294967168  ;;  %s33_s26 = sadd.s32 1, %s2836_s26   ;;  %s2840_s24 = sld [smem:[#allocation22_spill]] }
 0xa23   : > { %p30_p9 = scmp.ge.s32.totalorder %s33_s26, 4   ;;  %s2841_s23 = sld [smem:[#allocation27_spill]] }
 0xa24   : > { %s2842_s0 = sld [smem:[#allocation23_spill]]  ;;  %s2844_s21 = smov %s2336_s22 }
 0xa25   : > { %s2843_s25 = sld [smem:[#allocation25_spill]] }
 0xa26   :  { %32 = sbr.rel (!%p30_p9) target bundleno = 13 (0xd), region = 151 }
 0xa28   : > { %s2845_s22 = smov %s2840_s24 }
 0xa2a   : > { %s2846_s24 = smov %s2842_s0 }
 0xa2b   :  { %1583 = vsyncpa [#allocation4], 1 }
 0xa2c   :  { %1585 = vsyncpa [#allocation4 + $0x1], 1 }
 0xa2d   :  { %1586 = vsyncpa [#allocation7], 1 }
 0xa2e   :  { %1587 = vsyncpa [#allocation10], 1 }
 0xa2f   :  { %1588 = vsyncpa [#allocation13], 1 }
 0xa30   :  { %1589 = vsyncpa [#allocation5], 1 }
 0xa31   :  { %1591 = vsyncpa [#allocation5 + $0x1], 1 }

</bundles_post_ra>
